<compile_context>
chip_gen: v5e
topology: v5e:2x2
jax: 0.10.0
libtpu: 0.0.40
codegen_flags: <defaults>
</compile_context>

<pallas_src>
import functools

import jax
import jax.numpy as jnp
from jax.experimental import pallas as pl
from jax.experimental.pallas import tpu as pltpu

FEAT_C = 1792          # EfficientNet-b4 feature channels (fixed by nn.Linear(1792, ...))
BN_EPS = 1e-5
_LANE = 128
_NEG = -1e30           # bias for padded class lanes -> exp() underflows to 0


def _round_up(x, m):
    return (x + m - 1) // m * m


def _head_kernel(feat_ref, w1_ref, b1_ref, w2_ref, b2_ref, out_ref, acc_ref):
    # feat_ref: (B_tile, C_tile, HW)  NCHW features, spatial flattened on lanes
    # w1_ref:   (C_tile, H_pad)       BN scale + 1/HW already folded in
    # b1_ref:   (1, H_pad)            folded bias (b1, BN shift/mean)
    # w2_ref:   (H_pad, NC_pad)
    # b2_ref:   (1, NC_pad)           padded class lanes = -1e30
    # acc_ref:  (B_tile, H_pad) f32   accumulator over the C reduction axis
    c = pl.program_id(1)

    @pl.when(c == 0)
    def _():
        acc_ref[...] = jnp.zeros_like(acc_ref)

    # AdaptiveAvgPool2d(1): raw spatial sum (1/HW folded into w1), XLU lane reduce.
    pooled = jnp.sum(feat_ref[...].astype(jnp.float32), axis=2)       # (B_tile, C_tile)
    # Partial dense_layer1 (+ folded BN) over this C tile (MXU, f32 accumulate).
    acc_ref[...] += jnp.dot(pooled, w1_ref[...], preferred_element_type=jnp.float32)

    @pl.when(c == pl.num_programs(1) - 1)
    def _():
        # Dropout(0.1) in eval mode == identity; BatchNorm1d folded into w1/b1.
        h = acc_ref[...] + b1_ref[...]
        logits = jnp.dot(h, w2_ref[...], preferred_element_type=jnp.float32) + b2_ref[...]
        # Softmax(dim=1) over the padded lane width (padded lanes -> exp == 0).
        m = jnp.max(logits, axis=1, keepdims=True)
        e = jnp.exp(logits - m)
        denom = jnp.sum(e, axis=1, keepdims=True)
        out_ref[...] = (e * pl.reciprocal(denom, approx=True)).astype(out_ref.dtype)


@functools.partial(jax.jit, static_argnames=("b_tile", "c_tile"))
def img_model_head(feat_nchw, params, *, b_tile=None, c_tile=448):
    """feat_nchw: (B, 1792, Hf, Wf) backbone features (NCHW, like PyTorch)."""
    B, C, Hf, Wf = feat_nchw.shape
    assert C == FEAT_C
    hw = Hf * Wf

    if b_tile is None:
        b_tile = B if B <= 8 else 8
    assert B % b_tile == 0 and C % c_tile == 0 and c_tile % 8 == 0

    # FREE reshape (contiguous collapse of the trailing spatial dims) — no
    # extra HBM pass over the feature map.
    feat = feat_nchw.reshape(B, C, hw)

    hidden = params["w1"].shape[1]
    num_classes = params["w2"].shape[1]

    # ---- Fold BatchNorm1d (eval) + 1/HW into dense_layer1 (offline-style). ----
    scale = params["gamma"] * jax.lax.rsqrt(params["running_var"] + BN_EPS)    # (1, H)
    w1f = (params["w1"] * scale) * (1.0 / hw)                                  # (C, H)
    b1f = (params["b1"] - params["running_mean"]) * scale + params["beta"]     # (1, H)

    # ---- Pad hidden / classes up to lane-dense (128) widths. ----
    h_pad = _round_up(max(hidden, _LANE), _LANE)
    nc_pad = _round_up(max(num_classes, _LANE), _LANE)
    w1p = jnp.pad(w1f, ((0, 0), (0, h_pad - hidden))).astype(jnp.float32)
    b1p = jnp.pad(b1f, ((0, 0), (0, h_pad - hidden))).astype(jnp.float32)
    w2p = jnp.pad(params["w2"],
                  ((0, h_pad - hidden), (0, nc_pad - num_classes))).astype(jnp.float32)
    b2p = jnp.pad(params["b2"], ((0, 0), (0, nc_pad - num_classes)),
                  constant_values=_NEG).astype(jnp.float32)

    grid = (B // b_tile, C // c_tile)

    out_padded = pl.pallas_call(
        _head_kernel,
        out_shape=jax.ShapeDtypeStruct((B, nc_pad), jnp.float32),
        grid_spec=pltpu.PrefetchScalarGridSpec(
            num_scalar_prefetch=0,
            grid=grid,
            in_specs=[
                # Feature blocks stream double-buffered over the C reduction axis.
                pl.BlockSpec((b_tile, c_tile, hw), lambda b, c: (b, c, 0)),
                pl.BlockSpec((c_tile, h_pad), lambda b, c: (c, 0)),
                # C-independent index maps -> these stay VMEM resident.
                pl.BlockSpec((1, h_pad), lambda b, c: (0, 0)),
                pl.BlockSpec((h_pad, nc_pad), lambda b, c: (0, 0)),
                pl.BlockSpec((1, nc_pad), lambda b, c: (0, 0)),
            ],
            out_specs=pl.BlockSpec((b_tile, nc_pad), lambda b, c: (b, 0)),
            scratch_shapes=[pltpu.VMEM((b_tile, h_pad), jnp.float32)],
        ),
        compiler_params=pltpu.CompilerParams(
            # B axis parallel (2 TCs on v7x), C is the reduction axis.
            dimension_semantics=("parallel", "arbitrary"),
            # Blocks are sized well under v7x's 64 MiB VMEM; raise the scoped
            # limit above the 16/32 MiB defaults so bigger batches still fit.
            vmem_limit_bytes=48 * 1024 * 1024,
        ),
    )(feat, w1p, b1p, w2p, b2p)

    return out_padded[:, :num_classes]


def init_params(key, hidden_layer_size, num_classes):
    ks = jax.random.split(key, 8)
    lim1 = 1.0 / jnp.sqrt(FEAT_C)
    lim2 = 1.0 / jnp.sqrt(hidden_layer_size)
    return {
        "w1": jax.random.uniform(ks[0], (FEAT_C, hidden_layer_size), jnp.float32, -lim1, lim1),
        "b1": jax.random.uniform(ks[1], (1, hidden_layer_size), jnp.float32, -lim1, lim1),
        # Non-trivial BN stats so the folding path is actually exercised.
        "gamma": jax.random.uniform(ks[2], (1, hidden_layer_size), jnp.float32, 0.5, 1.5),
        "beta": 0.1 * jax.random.normal(ks[3], (1, hidden_layer_size), jnp.float32),
        "running_mean": 0.1 * jax.random.normal(ks[4], (1, hidden_layer_size), jnp.float32),
        "running_var": jax.random.uniform(ks[5], (1, hidden_layer_size), jnp.float32, 0.5, 1.5),
        "w2": jax.random.uniform(ks[6], (hidden_layer_size, num_classes), jnp.float32, -lim2, lim2),
        "b2": jax.random.uniform(ks[7], (1, num_classes), jnp.float32, -lim2, lim2),
    }


def _reference(feat_nchw, p):
    x = feat_nchw.astype(jnp.float32)
    pooled = jnp.mean(x, axis=(2, 3))                                  # (B, C)
    h = pooled @ p["w1"] + p["b1"]
    h = (h - p["running_mean"]) * jax.lax.rsqrt(p["running_var"] + BN_EPS) * p["gamma"] + p["beta"]
    logits = h @ p["w2"] + p["b2"]
    return jax.nn.softmax(logits, axis=1)


if __name__ == "__main__":
    hidden_layer_size = 32
    num_classes = 8
    B, Hf, Wf = 2, 4, 4   # small feature-map spatial (e.g. b4 features of a small image)

    key = jax.random.PRNGKey(0)
    k_feat, k_param = jax.random.split(key)
    params = init_params(k_param, hidden_layer_size, num_classes)
    # Backbone features consumed in bf16: halves HBM bytes on the mem-bound tensor.
    feats = jax.random.normal(k_feat, (B, FEAT_C, Hf, Wf), jnp.float32).astype(jnp.bfloat16)

    out = img_model_head(feats, params)
    out = jax.block_until_ready(out)

    ref = _reference(feats, params)
    assert out.shape == (B, num_classes)
    # Tolerance covers the approximate (EUP) softmax reciprocal; everything else
    # accumulates in f32.
    assert jnp.allclose(out, ref, atol=2e-3, rtol=2e-3), (out, ref)
    assert jnp.allclose(jnp.sum(out, axis=1), 1.0, atol=2e-3)

    print("KERNEL_OK")
</pallas_src>

<mosaic_0001>
module attributes {stable_mosaic.version = 11 : i64} {
  func.func @_head_kernel(%arg0: i32, %arg1: i32, %arg2: memref<2x448x16xbf16, #tpu.memory_space<vmem>>, %arg3: memref<448x128xf32, #tpu.memory_space<vmem>>, %arg4: memref<1x128xf32, #tpu.memory_space<vmem>>, %arg5: memref<128x128xf32, #tpu.memory_space<vmem>>, %arg6: memref<1x128xf32, #tpu.memory_space<vmem>>, %arg7: memref<2x128xf32, #tpu.memory_space<vmem>>, %arg8: memref<2x128xf32, #tpu.memory_space<vmem>>) attributes {dimension_semantics = [#tpu.dimension_semantics<parallel>, #tpu.dimension_semantics<arbitrary>], iteration_bounds = array<i64: 1, 4>, scalar_prefetch = 0 : i64, scratch_operands = 1 : i64, tpu.core_type = #tpu.core_type<tc>, window_params = [{transform_indices = @transform_0, window_bounds = array<i64: 2, 448, 16>}, {transform_indices = @transform_1, window_bounds = array<i64: 448, 128>}, {pipeline_mode = #tpu.pipeline_mode<synchronous>, transform_indices = @transform_2, window_bounds = array<i64: 1, 128>}, {pipeline_mode = #tpu.pipeline_mode<synchronous>, transform_indices = @transform_3, window_bounds = array<i64: 128, 128>}, {pipeline_mode = #tpu.pipeline_mode<synchronous>, transform_indices = @transform_4, window_bounds = array<i64: 1, 128>}, {transform_indices = @transform_5, window_bounds = array<i64: 2, 128>}]} {
    %c0_i32 = arith.constant 0 : i32
    %0 = arith.cmpi eq, %arg1, %c0_i32 : i32
    %1 = arith.extui %0 : i1 to i32
    %c0_i32_0 = arith.constant 0 : i32
    %2 = arith.cmpi ne, %1, %c0_i32_0 : i32
    scf.if %2 {
      %cst_11 = arith.constant 0.000000e+00 : f32
      %14 = vector.broadcast %cst_11 : f32 to vector<2x128xf32>
      %c0_12 = arith.constant 0 : index
      %c0_13 = arith.constant 0 : index
      %15 = vector.load %arg8[%c0_12, %c0_13] : memref<2x128xf32, #tpu.memory_space<vmem>>, vector<2x128xf32>
      tpu.vector_store %arg8[%c0_12, %c0_13], %14 {strides = array<i32>} : memref<2x128xf32, #tpu.memory_space<vmem>>, vector<2x128xf32>,
    } else {
    }
    %c0 = arith.constant 0 : index
    %c0_1 = arith.constant 0 : index
    %c0_2 = arith.constant 0 : index
    %3 = vector.load %arg2[%c0, %c0_1, %c0_2] : memref<2x448x16xbf16, #tpu.memory_space<vmem>>, vector<2x448x16xbf16>
    %4 = arith.extf %3 : vector<2x448x16xbf16> to vector<2x448x16xf32>
    %cst = arith.constant dense<0.000000e+00> : vector<2x448xf32>
    %5 = vector.multi_reduction <add>, %4, %cst [2] : vector<2x448x16xf32> to vector<2x448xf32>
    %c0_3 = arith.constant 0 : index
    %c0_4 = arith.constant 0 : index
    %6 = vector.load %arg8[%c0_3, %c0_4] : memref<2x128xf32, #tpu.memory_space<vmem>>, vector<2x128xf32>
    %c0_5 = arith.constant 0 : index
    %c0_6 = arith.constant 0 : index
    %7 = vector.load %arg3[%c0_5, %c0_6] : memref<448x128xf32, #tpu.memory_space<vmem>>, vector<448x128xf32>
    %cst_7 = arith.constant dense<0.000000e+00> : vector<2x128xf32>
    %8 = tpu.matmul %5, %7, %cst_7 {dimension_numbers = #tpu.dot_dimension_numbers<[1], [0], [0], [1], [0, 0, 1, 1], [], []>} : vector<2x448xf32>, vector<448x128xf32>, vector<2x128xf32> -> vector<2x128xf32>
    %9 = arith.addf %6, %8 : vector<2x128xf32>
    %c0_8 = arith.constant 0 : index
    %c0_9 = arith.constant 0 : index
    %10 = vector.load %arg8[%c0_8, %c0_9] : memref<2x128xf32, #tpu.memory_space<vmem>>, vector<2x128xf32>
    tpu.vector_store %arg8[%c0_8, %c0_9], %9 {strides = array<i32>} : memref<2x128xf32, #tpu.memory_space<vmem>>, vector<2x128xf32>,
    %c3_i32 = arith.constant 3 : i32
    %11 = arith.cmpi eq, %arg1, %c3_i32 : i32
    %12 = arith.extui %11 : i1 to i32
    %c0_i32_10 = arith.constant 0 : i32
    %13 = arith.cmpi ne, %12, %c0_i32_10 : i32
    scf.if %13 {
      %c0_11 = arith.constant 0 : index
      %c0_12 = arith.constant 0 : index
      %14 = vector.load %arg8[%c0_11, %c0_12] : memref<2x128xf32, #tpu.memory_space<vmem>>, vector<2x128xf32>
      %c0_13 = arith.constant 0 : index
      %c0_14 = arith.constant 0 : index
      %15 = vector.load %arg4[%c0_13, %c0_14] : memref<1x128xf32, #tpu.memory_space<vmem>>, vector<1x128xf32>
      %16 = vector.broadcast %15 : vector<1x128xf32> to vector<2x128xf32>
      %17 = arith.addf %14, %16 : vector<2x128xf32>
      %c0_15 = arith.constant 0 : index
      %c0_16 = arith.constant 0 : index
      %18 = vector.load %arg5[%c0_15, %c0_16] : memref<128x128xf32, #tpu.memory_space<vmem>>, vector<128x128xf32>
      %cst_17 = arith.constant dense<0.000000e+00> : vector<2x128xf32>
      %19 = tpu.matmul %17, %18, %cst_17 {dimension_numbers = #tpu.dot_dimension_numbers<[1], [0], [0], [1], [0, 0, 1, 1], [], []>} : vector<2x128xf32>, vector<128x128xf32>, vector<2x128xf32> -> vector<2x128xf32>
      %c0_18 = arith.constant 0 : index
      %c0_19 = arith.constant 0 : index
      %20 = vector.load %arg6[%c0_18, %c0_19] : memref<1x128xf32, #tpu.memory_space<vmem>>, vector<1x128xf32>
      %21 = vector.broadcast %20 : vector<1x128xf32> to vector<2x128xf32>
      %22 = arith.addf %19, %21 : vector<2x128xf32>
      %cst_20 = arith.constant dense<0xFF800000> : vector<2xf32>
      %23 = vector.multi_reduction <maximumf>, %22, %cst_20 [1] : vector<2x128xf32> to vector<2xf32>
      %24 = vector.shape_cast %23 : vector<2xf32> to vector<2x1xf32>
      %25 = vector.broadcast %24 : vector<2x1xf32> to vector<2x128xf32>
      %26 = arith.subf %22, %25 : vector<2x128xf32>
      %27 = math.exp %26 : vector<2x128xf32>
      %cst_21 = arith.constant dense<0.000000e+00> : vector<2xf32>
      %28 = vector.multi_reduction <add>, %27, %cst_21 [1] : vector<2x128xf32> to vector<2xf32>
      %29 = vector.shape_cast %28 : vector<2xf32> to vector<2x1xf32>
      %30 = tpu.reciprocal %29 {approx = true} : vector<2x1xf32> -> vector<2x1xf32>
      %31 = vector.broadcast %30 : vector<2x1xf32> to vector<2x128xf32>
      %32 = arith.mulf %27, %31 : vector<2x128xf32>
      %c0_22 = arith.constant 0 : index
      %c0_23 = arith.constant 0 : index
      %33 = vector.load %arg7[%c0_22, %c0_23] : memref<2x128xf32, #tpu.memory_space<vmem>>, vector<2x128xf32>
      tpu.vector_store %arg7[%c0_22, %c0_23], %32 {strides = array<i32>} : memref<2x128xf32, #tpu.memory_space<vmem>>, vector<2x128xf32>,
    } else {
    }
    return
  }
  func.func @transform_0(%arg0: i32, %arg1: i32) -> (i32, i32, i32) {
    %c0_i32 = arith.constant 0 : i32
    %c0_i32_0 = arith.constant 0 : i32
    return %arg0, %arg1, %c0_i32 : i32, i32, i32
  }
  func.func @transform_1(%arg0: i32, %arg1: i32) -> (i32, i32) {
    %c0_i32 = arith.constant 0 : i32
    %c0_i32_0 = arith.constant 0 : i32
    return %arg1, %c0_i32 : i32, i32
  }
  func.func @transform_2(%arg0: i32, %arg1: i32) -> (i32, i32) {
    %c0_i32 = arith.constant 0 : i32
    %c0_i32_0 = arith.constant 0 : i32
    %c0_i32_1 = arith.constant 0 : i32
    return %c0_i32, %c0_i32_0 : i32, i32
  }
  func.func @transform_3(%arg0: i32, %arg1: i32) -> (i32, i32) {
    %c0_i32 = arith.constant 0 : i32
    %c0_i32_0 = arith.constant 0 : i32
    %c0_i32_1 = arith.constant 0 : i32
    return %c0_i32, %c0_i32_0 : i32, i32
  }
  func.func @transform_4(%arg0: i32, %arg1: i32) -> (i32, i32) {
    %c0_i32 = arith.constant 0 : i32
    %c0_i32_0 = arith.constant 0 : i32
    %c0_i32_1 = arith.constant 0 : i32
    return %c0_i32, %c0_i32_0 : i32, i32
  }
  func.func @transform_5(%arg0: i32, %arg1: i32) -> (i32, i32) {
    %c0_i32 = arith.constant 0 : i32
    %c0_i32_0 = arith.constant 0 : i32
    return %arg0, %c0_i32 : i32, i32
  }
}

</mosaic_0001>

<bundles_post_ra>
// kernel: img_model_head.1
= control target key start
LH: loop header
LB: loop body
LE: loop exit
PB: predicated region body
PF: predicated region fallthrough
CT: control target
= control target key end

     0   :  { %10 = vsyncpa [#allocation5], 0  ;;  %s2419_s18 = smov 0   ;;  %s2421_s19 = smov 0   ;;  %s3233_s0 = inlined_call_operand.vmem [shape: bf16[2,1792,16], index: 0, kind: input, shape index: {}]   ;;  %s3234_s1 = inlined_call_operand.vmem [shape: f32[1792,128], index: 1, kind: input, shape index: {}]   ;;  %s3235_s2 = inlined_call_operand.vmem [shape: f32[1,128], index: 2, kind: input, shape index: {}]   ;;  %s3236_s3 = inlined_call_operand.vmem [shape: f32[128,128], index: 3, kind: input, shape index: {}]   ;;  %s3237_s4 = inlined_call_operand.vmem [shape: f32[1,128], index: 4, kind: input, shape index: {}]   ;;  %s3238_s5 = inlined_call_operand.hbm [shape: f32[2,128], index: 5, kind: output, shape index: {}]  }
   0x1   :  { %s2423_s20 = smov 0   ;;  %s2425_s21 = smov 0  }
   0x2   :  { %s2427_s22 = smov 0  }
   0x3 LB: > { %s1966_s23 = sadd.s32 4294967295, %s2385_s22   ;;  %s25_s24 = sadd.s32 1, %s2381_s21  ;;  %s2385_s22 = sphi %s2427_s22, %s16_s22   ;;  %s2381_s21 = sphi %s2425_s21, %s3242_s21   ;;  %s2377_s20 = sphi %s2423_s20, %s3241_s20   ;;  %s2373_s19 = sphi %s2421_s19, %s3240_s19   ;;  %s2369_s18 = sphi %s2419_s18, %s3239_s18  }
   0x4   : > { %p26_p0 = scmp.ge.s32.totalorder %s25_s24, 4  ;;  %p44_p1 = scmp.ne.s32.totalorder %s2373_s19, %s2369_s18 }
   0x5   : > { %p45_p2 = scmp.eq.s32.totalorder %s2385_s22, 0  ;;  %s37_s26 = sadd.s32 1, %s2373_s19 }
   0x6   : > { %s3244_s24 = smov (%p26_p0, %s25_s24), 0  ;;  %p1968_p5 = scmp.ge.s32.totalorder %s2385_s22, 4 }
   0x7   : > { %p46_p3 = por %p45_p2, %p44_p1  ;;  %s33_s25 = ssub.s32 %s2381_s21, %s3244_s24 }
   0x8   : > { %p35_p4 = scmp.eq.s32.totalorder %s33_s25, 0  ;;  %194 = sbr.rel (%p1968_p5) target bundleno = 74 (0x4a), region = 28 }
   0xa   : > { %s2455_s27 = scalar_select %p35_p4, %s2373_s19, %s37_s26  }
   0xd   : > { %197 = sbr.rel (!%p46_p3) target bundleno = 74 (0x4a), region = 32  ;;  %s199_s28 = sand.u32 (%p46_p3), 1, %s2373_s19  }
   0xe   : > { %s1979_s29 = smul.u32 (%p46_p3), 224, %s2381_s21 }
   0xf   : > { %s2259_s30 = smul.u32 (%p46_p3), 448, %s199_s28 }
  0x10   : > { %s2463_s8 = scalar_lea.vmem (%p46_p3), %s3233_s0, %s1979_s29 }
  0x11   : > { %v224_v0 = vld [vmem:[%s2463_s8] sm:$0xff] (%p46_p3)   ;;  %v228_v1 = vld [vmem:[%s2463_s8 + $0x8] sm:$0xff] (%p46_p3)   ;;  %v232_v2 = vld [vmem:[%s2463_s8 + $0x10] sm:$0xff] (%p46_p3)   ;;  %s2468_s9 = scalar_lea.vmem (%p46_p3), [#allocation3], %s2259_s30 }
  0x12   : > { %225 = vst [vmem:[%s2468_s9] sm:$0xff] %v224_v0   ;;  %v236_v3 = vld [vmem:[%s2463_s8 + $0x18] sm:$0xff]   ;;  %v240_v4 = vld [vmem:[%s2463_s8 + $0x20] sm:$0xff]   ;;  %v244_v5 = vld [vmem:[%s2463_s8 + $0x28] sm:$0xff]  }
  0x13   : > { %229 = vst [vmem:[%s2468_s9 + $0x8] sm:$0xff] %v228_v1   ;;  %v248_v6 = vld [vmem:[%s2463_s8 + $0x30] sm:$0xff]   ;;  %v252_v7 = vld [vmem:[%s2463_s8 + $0x38] sm:$0xff]   ;;  %v256_v8 = vld [vmem:[%s2463_s8 + $0x40] sm:$0xff]  }
  0x14   : > { %233 = vst [vmem:[%s2468_s9 + $0x10] sm:$0xff] %v232_v2   ;;  %v260_v9 = vld [vmem:[%s2463_s8 + $0x48] sm:$0xff]   ;;  %v264_v10 = vld [vmem:[%s2463_s8 + $0x50] sm:$0xff]   ;;  %v268_v11 = vld [vmem:[%s2463_s8 + $0x58] sm:$0xff]  }
  0x15   : > { %237 = vst [vmem:[%s2468_s9 + $0x18] sm:$0xff] %v236_v3   ;;  %v272_v12 = vld [vmem:[%s2463_s8 + $0x60] sm:$0xff]   ;;  %v276_v13 = vld [vmem:[%s2463_s8 + $0x68] sm:$0xff]   ;;  %v280_v14 = vld [vmem:[%s2463_s8 + $0x70] sm:$0xff]  }
  0x16   : > { %241 = vst [vmem:[%s2468_s9 + $0x20] sm:$0xff] %v240_v4   ;;  %v284_v15 = vld [vmem:[%s2463_s8 + $0x78] sm:$0xff]   ;;  %v288_v16 = vld [vmem:[%s2463_s8 + $0x80] sm:$0xff]   ;;  %v292_v17 = vld [vmem:[%s2463_s8 + $0x88] sm:$0xff]  }
  0x17   : > { %245 = vst [vmem:[%s2468_s9 + $0x28] sm:$0xff] %v244_v5   ;;  %v296_v18 = vld [vmem:[%s2463_s8 + $0x90] sm:$0xff]   ;;  %v300_v19 = vld [vmem:[%s2463_s8 + $0x98] sm:$0xff]   ;;  %v304_v20 = vld [vmem:[%s2463_s8 + $0xa0] sm:$0xff]  }
  0x18   : > { %249 = vst [vmem:[%s2468_s9 + $0x30] sm:$0xff] %v248_v6   ;;  %v308_v21 = vld [vmem:[%s2463_s8 + $0xa8] sm:$0xff]   ;;  %v312_v22 = vld [vmem:[%s2463_s8 + $0xb0] sm:$0xff]   ;;  %v316_v23 = vld [vmem:[%s2463_s8 + $0xb8] sm:$0xff]  }
  0x19   : > { %253 = vst [vmem:[%s2468_s9 + $0x38] sm:$0xff] %v252_v7   ;;  %v320_v24 = vld [vmem:[%s2463_s8 + $0xc0] sm:$0xff]   ;;  %v324_v25 = vld [vmem:[%s2463_s8 + $0xc8] sm:$0xff]   ;;  %v328_v26 = vld [vmem:[%s2463_s8 + $0xd0] sm:$0xff]  }
  0x1a   : > { %257 = vst [vmem:[%s2468_s9 + $0x40] sm:$0xff] %v256_v8   ;;  %v332_v27 = vld [vmem:[%s2463_s8 + $0xd8] sm:$0xff]   ;;  %v336_v28 = vld [vmem:[%s2463_s8 + $0x380] sm:$0xff]   ;;  %v340_v29 = vld [vmem:[%s2463_s8 + $0x388] sm:$0xff]  }
  0x1b   : > { %261 = vst [vmem:[%s2468_s9 + $0x48] sm:$0xff] %v260_v9   ;;  %v344_v30 = vld [vmem:[%s2463_s8 + $0x390] sm:$0xff]   ;;  %v348_v31 = vld [vmem:[%s2463_s8 + $0x398] sm:$0xff]   ;;  %v352_v32 = vld [vmem:[%s2463_s8 + $0x3a0] sm:$0xff]  }
  0x1c   : > { %265 = vst [vmem:[%s2468_s9 + $0x50] sm:$0xff] %v264_v10   ;;  %v356_v33 = vld [vmem:[%s2463_s8 + $0x3a8] sm:$0xff]   ;;  %v360_v34 = vld [vmem:[%s2463_s8 + $0x3b0] sm:$0xff]   ;;  %v364_v35 = vld [vmem:[%s2463_s8 + $0x3b8] sm:$0xff]  }
  0x1d   : > { %269 = vst [vmem:[%s2468_s9 + $0x58] sm:$0xff] %v268_v11   ;;  %v368_v36 = vld [vmem:[%s2463_s8 + $0x3c0] sm:$0xff]   ;;  %v372_v37 = vld [vmem:[%s2463_s8 + $0x3c8] sm:$0xff]   ;;  %v376_v38 = vld [vmem:[%s2463_s8 + $0x3d0] sm:$0xff]  }
  0x1e   : > { %273 = vst [vmem:[%s2468_s9 + $0x60] sm:$0xff] %v272_v12   ;;  %v380_v39 = vld [vmem:[%s2463_s8 + $0x3d8] sm:$0xff]   ;;  %v384_v40 = vld [vmem:[%s2463_s8 + $0x3e0] sm:$0xff]   ;;  %v388_v41 = vld [vmem:[%s2463_s8 + $0x3e8] sm:$0xff]  }
  0x1f   : > { %277 = vst [vmem:[%s2468_s9 + $0x68] sm:$0xff] %v276_v13   ;;  %v392_v42 = vld [vmem:[%s2463_s8 + $0x3f0] sm:$0xff]   ;;  %v396_v43 = vld [vmem:[%s2463_s8 + $0x3f8] sm:$0xff]   ;;  %v400_v44 = vld [vmem:[%s2463_s8 + $0x400] sm:$0xff]  }
  0x20   : > { %281 = vst [vmem:[%s2468_s9 + $0x70] sm:$0xff] %v280_v14   ;;  %v404_v45 = vld [vmem:[%s2463_s8 + $0x408] sm:$0xff]   ;;  %v408_v46 = vld [vmem:[%s2463_s8 + $0x410] sm:$0xff]   ;;  %v412_v47 = vld [vmem:[%s2463_s8 + $0x418] sm:$0xff]  }
  0x21   : > { %285 = vst [vmem:[%s2468_s9 + $0x78] sm:$0xff] %v284_v15   ;;  %v416_v48 = vld [vmem:[%s2463_s8 + $0x420] sm:$0xff]   ;;  %v420_v49 = vld [vmem:[%s2463_s8 + $0x428] sm:$0xff]   ;;  %v424_v50 = vld [vmem:[%s2463_s8 + $0x430] sm:$0xff]  }
  0x22   : > { %289 = vst [vmem:[%s2468_s9 + $0x80] sm:$0xff] %v288_v16   ;;  %v428_v51 = vld [vmem:[%s2463_s8 + $0x438] sm:$0xff]   ;;  %v432_v52 = vld [vmem:[%s2463_s8 + $0x440] sm:$0xff]   ;;  %v436_v53 = vld [vmem:[%s2463_s8 + $0x448] sm:$0xff]  }
  0x23   : > { %293 = vst [vmem:[%s2468_s9 + $0x88] sm:$0xff] %v292_v17   ;;  %v440_v54 = vld [vmem:[%s2463_s8 + $0x450] sm:$0xff]   ;;  %v444_v55 = vld [vmem:[%s2463_s8 + $0x458] sm:$0xff]  }
  0x24   : > { %297 = vst [vmem:[%s2468_s9 + $0x90] sm:$0xff] %v296_v18  }
  0x25   : > { %301 = vst [vmem:[%s2468_s9 + $0x98] sm:$0xff] %v300_v19  }
  0x26   : > { %305 = vst [vmem:[%s2468_s9 + $0xa0] sm:$0xff] %v304_v20  }
  0x27   : > { %309 = vst [vmem:[%s2468_s9 + $0xa8] sm:$0xff] %v308_v21  }
  0x28   : > { %313 = vst [vmem:[%s2468_s9 + $0xb0] sm:$0xff] %v312_v22  }
  0x29   : > { %317 = vst [vmem:[%s2468_s9 + $0xb8] sm:$0xff] %v316_v23  }
  0x2a   : > { %321 = vst [vmem:[%s2468_s9 + $0xc0] sm:$0xff] %v320_v24  }
  0x2b   : > { %325 = vst [vmem:[%s2468_s9 + $0xc8] sm:$0xff] %v324_v25  }
  0x2c   : > { %329 = vst [vmem:[%s2468_s9 + $0xd0] sm:$0xff] %v328_v26  }
  0x2d   : > { %333 = vst [vmem:[%s2468_s9 + $0xd8] sm:$0xff] %v332_v27  }
  0x2e   : > { %337 = vst [vmem:[%s2468_s9 + $0xe0] sm:$0xff] %v336_v28  }
  0x2f   : > { %341 = vst [vmem:[%s2468_s9 + $0xe8] sm:$0xff] %v340_v29  }
  0x30   : > { %345 = vst [vmem:[%s2468_s9 + $0xf0] sm:$0xff] %v344_v30  }
  0x31   : > { %349 = vst [vmem:[%s2468_s9 + $0xf8] sm:$0xff] %v348_v31  }
  0x32   : > { %353 = vst [vmem:[%s2468_s9 + $0x100] sm:$0xff] %v352_v32  }
  0x33   : > { %357 = vst [vmem:[%s2468_s9 + $0x108] sm:$0xff] %v356_v33  }
  0x34   : > { %361 = vst [vmem:[%s2468_s9 + $0x110] sm:$0xff] %v360_v34  }
  0x35   : > { %365 = vst [vmem:[%s2468_s9 + $0x118] sm:$0xff] %v364_v35  }
  0x36   : > { %369 = vst [vmem:[%s2468_s9 + $0x120] sm:$0xff] %v368_v36  }
  0x37   : > { %373 = vst [vmem:[%s2468_s9 + $0x128] sm:$0xff] %v372_v37  }
  0x38   : > { %377 = vst [vmem:[%s2468_s9 + $0x130] sm:$0xff] %v376_v38  }
  0x39   : > { %381 = vst [vmem:[%s2468_s9 + $0x138] sm:$0xff] %v380_v39  }
  0x3a   : > { %385 = vst [vmem:[%s2468_s9 + $0x140] sm:$0xff] %v384_v40  }
  0x3b   : > { %389 = vst [vmem:[%s2468_s9 + $0x148] sm:$0xff] %v388_v41  }
  0x3c   : > { %393 = vst [vmem:[%s2468_s9 + $0x150] sm:$0xff] %v392_v42  }
  0x3d   : > { %397 = vst [vmem:[%s2468_s9 + $0x158] sm:$0xff] %v396_v43  }
  0x3e   : > { %401 = vst [vmem:[%s2468_s9 + $0x160] sm:$0xff] %v400_v44  }
  0x3f   : > { %405 = vst [vmem:[%s2468_s9 + $0x168] sm:$0xff] %v404_v45  }
  0x40   : > { %409 = vst [vmem:[%s2468_s9 + $0x170] sm:$0xff] %v408_v46  }
  0x41   : > { %413 = vst [vmem:[%s2468_s9 + $0x178] sm:$0xff] %v412_v47  }
  0x42   : > { %417 = vst [vmem:[%s2468_s9 + $0x180] sm:$0xff] %v416_v48  }
  0x43   : > { %421 = vst [vmem:[%s2468_s9 + $0x188] sm:$0xff] %v420_v49  }
  0x44   : > { %425 = vst [vmem:[%s2468_s9 + $0x190] sm:$0xff] %v424_v50  }
  0x45   : > { %429 = vst [vmem:[%s2468_s9 + $0x198] sm:$0xff] %v428_v51  }
  0x46   : > { %433 = vst [vmem:[%s2468_s9 + $0x1a0] sm:$0xff] %v432_v52  }
  0x47   : > { %437 = vst [vmem:[%s2468_s9 + $0x1a8] sm:$0xff] %v436_v53  }
  0x48   : > { %441 = vst [vmem:[%s2468_s9 + $0x1b0] sm:$0xff] %v440_v54  }
  0x49   : > { %445 = vst [vmem:[%s2468_s9 + $0x1b8] sm:$0xff] %v444_v55  }
  0x4a PF: > { %p1970_p6 = scmp.ge.s32.totalorder %s2385_s22, 1  ;;  %p703_p7 = scmp.lt.s32.totalorder %s2385_s22, 5 }
  0x4c   : > { %p704_p8 = pnand %p1970_p6, %p703_p7 }
  0x4d   : > { %s710_s10 = sand.u32 (!%p704_p8), 1, %s2369_s18   ;;  %s739_s11 = smul.u32 (!%p704_p8), 56, %s2377_s20 }
  0x4e   : > { %707 = sbr.rel (%p704_p8) target bundleno = 1067 (0x42b), region = 77  ;;  %p1972_p10 = scmp.ne.s32.totalorder (!%p704_p8), %s2377_s20, 0 }
  0x4f   : > { %s2260_s12 = smul.u32 (!%p704_p8), 448, %s710_s10  ;;  %p740_p9 = scmp.lt.s32.totalorder (!%p704_p8), %s739_s11, 223 }
  0x51   : > { %s2588_s17 = scalar_lea.vmem (!%p704_p8), [#allocation3], %s2260_s12 }
  0x53   : > { %s3246_s11 = smov (!%p740_p9, %s739_s11), 223  ;;  %748 = sbr.rel (%p1972_p10) target bundleno = 90 (0x5a), region = 85 }
  0x54   : > { %s1971_s13 = sshll.u32 %s3246_s11, 3 }
  0x55   : > { %s2586_s16 = scalar_lea.vmem %s3234_s1, %s1971_s13 }
  0x58   : > { %v2387_v56 = vmov 0.0  }
  0x59   : > { %749 = vst [vmem:[#allocation2] sm:$0x3] %v2387_v56 }
  0x5a PF: > { %v2205_v57 = vld [vmem:[%s2588_s17 + $0x10] sm:$0xff]   ;;  %vm974_vm0 = vcmask 130048   ;;  %v2204_v58 = vld [vmem:[%s2588_s17 + $0x8] sm:$0xff]   ;;  %v1981_v59 = vld [vmem:[%s2588_s17] sm:$0xff]   ;;  %vm1485_vm1 = vcmask 130112   ;;  %vm1489_vm2 = vcmask 195712  }
  0x5b   : > { %v1990_v60 = vunpack.c.l.bf16 %v2205_v57  ;;  %v1986_v61 = vunpack.c.l.bf16 %v2204_v58  ;;  %v1982_v62 = vunpack.c.l.bf16 %v1981_v59  ;;  %v1991_v2 = vunpack.c.h.bf16 %v2205_v57  ;;  %v2207_v8 = vld [vmem:[%s2588_s17 + $0x20] sm:$0xff]   ;;  %v2206_v9 = vld [vmem:[%s2588_s17 + $0x18] sm:$0xff]   ;;  %v2208_v16 = vld [vmem:[%s2588_s17 + $0x28] sm:$0xff]   ;;  %p1974_p11 = scmp.ne.s32.totalorder %s2377_s20, 3 }
  0x5c   : > { %v1987_v3 = vunpack.c.h.bf16 %v2204_v58  ;;  %v1983_v4 = vunpack.c.h.bf16 %v1981_v59  ;;  %v1998_v10 = vunpack.c.l.bf16 %v2207_v8  ;;  %v1995_v11 = vunpack.c.h.bf16 %v2206_v9  ;;  %v2210_v23 = vld [vmem:[%s2588_s17 + $0x38] sm:$0xff]   ;;  %v2209_v24 = vld [vmem:[%s2588_s17 + $0x30] sm:$0xff]   ;;  %v2211_v31 = vld [vmem:[%s2588_s17 + $0x40] sm:$0xff]  }
  0x5d   : > { %v987_v63 = vsel %vm974_vm0, %v1990_v60, 0.0  ;;  %v981_v0 = vsel %vm974_vm0, %v1986_v61, 0.0  ;;  %v975_v1 = vsel %vm974_vm0, %v1982_v62, 0.0  ;;  %v990_v5 = vsel %vm974_vm0, %v1991_v2, 0.0  ;;  %v2213_v38 = vld [vmem:[%s2588_s17 + $0x50] sm:$0xff]   ;;  %v2212_v39 = vld [vmem:[%s2588_s17 + $0x48] sm:$0xff]  }
  0x5e   : > { %988 = vadd.xlane.f32.xlu2 %v987_v63  ;;  %982 = vadd.xlane.f32.xlu1 %v981_v0  ;;  %v984_v6 = vsel %vm974_vm0, %v1987_v3, 0.0  ;;  %v978_v7 = vsel %vm974_vm0, %v1983_v4, 0.0  ;;  %v1994_v12 = vunpack.c.l.bf16 %v2206_v9  ;;  %v999_v13 = vsel %vm974_vm0, %v1998_v10, 0.0  ;;  %v2214_v46 = vld [vmem:[%s2588_s17 + $0x58] sm:$0xff]   ;;  %v2216_v53 = vld [vmem:[%s2588_s17 + $0x68] sm:$0xff]   ;;  %v2215_v54 = vld [vmem:[%s2588_s17 + $0x60] sm:$0xff]  }
  0x5f   : > { %976 = vadd.xlane.f32.xlu0 %v975_v1  ;;  %v996_v14 = vsel %vm974_vm0, %v1995_v11, 0.0  ;;  %v2003_v17 = vunpack.c.h.bf16 %v2208_v16  ;;  %v2002_v18 = vunpack.c.l.bf16 %v2208_v16  ;;  %v1999_v19 = vunpack.c.h.bf16 %v2207_v8  ;;  %v2217_v61 = vld [vmem:[%s2588_s17 + $0x70] sm:$0xff]   ;;  %v2219_v4 = vld [vmem:[%s2588_s17 + $0x80] sm:$0xff]  }
  0x60   : > { %v993_v15 = vsel %vm974_vm0, %v1994_v12, 0.0  ;;  %v2010_v25 = vunpack.c.l.bf16 %v2210_v23  ;;  %v2007_v26 = vunpack.c.h.bf16 %v2209_v24  ;;  %v2006_v27 = vunpack.c.l.bf16 %v2209_v24  ;;  %v2220_v12 = vld [vmem:[%s2588_s17 + $0x88] sm:$0xff]  }
  0x61   : > { %v1008_v20 = vsel %vm974_vm0, %v2003_v17, 0.0  ;;  %v1005_v21 = vsel %vm974_vm0, %v2002_v18, 0.0  ;;  %v1002_v22 = vsel %vm974_vm0, %v1999_v19, 0.0  ;;  %v2015_v32 = vunpack.c.h.bf16 %v2211_v31  ;;  %v2222_v19 = vld [vmem:[%s2588_s17 + $0x98] sm:$0xff]  }
  0x62   : > { %v1017_v28 = vsel %vm974_vm0, %v2010_v25, 0.0  ;;  %v1014_v29 = vsel %vm974_vm0, %v2007_v26, 0.0  ;;  %v1011_v30 = vsel %vm974_vm0, %v2006_v27, 0.0  ;;  %v2014_v33 = vunpack.c.l.bf16 %v2211_v31  ;;  %v2223_v27 = vld [vmem:[%s2588_s17 + $0xa0] sm:$0xff]  }
  0x63   : > { %v2011_v34 = vunpack.c.h.bf16 %v2210_v23  ;;  %v1026_v35 = vsel %vm974_vm0, %v2015_v32, 0.0  ;;  %v2022_v40 = vunpack.c.l.bf16 %v2213_v38  ;;  %v2019_v41 = vunpack.c.h.bf16 %v2212_v39 }
  0x64   : > { %v1023_v36 = vsel %vm974_vm0, %v2014_v33, 0.0  ;;  %v2018_v42 = vunpack.c.l.bf16 %v2212_v39  ;;  %v2027_v47 = vunpack.c.h.bf16 %v2214_v46  ;;  %v2026_v48 = vunpack.c.l.bf16 %v2214_v46 }
  0x65   : > { %v1020_v37 = vsel %vm974_vm0, %v2011_v34, 0.0  ;;  %v1035_v43 = vsel %vm974_vm0, %v2022_v40, 0.0  ;;  %v1032_v44 = vsel %vm974_vm0, %v2019_v41, 0.0  ;;  %v2023_v49 = vunpack.c.h.bf16 %v2213_v38  ;;  %v2225_v34 = vld [vmem:[%s2588_s17 + $0xb0] sm:$0xff]  }
  0x66   : > { %991 = vadd.xlane.f32.xlu2 %v990_v5  ;;  %985 = vadd.xlane.f32.xlu1 %v984_v6  ;;  %v1029_v45 = vsel %vm974_vm0, %v2018_v42, 0.0  ;;  %v1044_v50 = vsel %vm974_vm0, %v2027_v47, 0.0  ;;  %v1041_v51 = vsel %vm974_vm0, %v2026_v48, 0.0  ;;  %v2034_v55 = vunpack.c.l.bf16 %v2216_v53  ;;  %v2218_v5 = vld [vmem:[%s2588_s17 + $0x78] sm:$0xff]   ;;  %v2247_v42 = vld [vmem:[%s2588_s17 + $0x160] sm:$0xff]  }
  0x67   : > { %979 = vadd.xlane.f32.xlu0 %v978_v7  ;;  %v1038_v52 = vsel %vm974_vm0, %v2023_v49, 0.0  ;;  %v2031_v56 = vunpack.c.h.bf16 %v2215_v54  ;;  %v2030_v57 = vunpack.c.l.bf16 %v2215_v54  ;;  %v2039_v62 = vunpack.c.h.bf16 %v2217_v61 }
  0x68   : > { %v1053_v58 = vsel %vm974_vm0, %v2034_v55, 0.0  ;;  %v2038_v63 = vunpack.c.l.bf16 %v2217_v61  ;;  %v2035_v0 = vunpack.c.h.bf16 %v2216_v53  ;;  %v2046_v6 = vunpack.c.l.bf16 %v2219_v4  ;;  %v2248_v53 = vld [vmem:[%s2588_s17 + $0x168] sm:$0xff]  }
  0x69   : > { %v1050_v59 = vsel %vm974_vm0, %v2031_v56, 0.0  ;;  %v1047_v60 = vsel %vm974_vm0, %v2030_v57, 0.0  ;;  %v1062_v1 = vsel %vm974_vm0, %v2039_v62, 0.0  ;;  %v2043_v7 = vunpack.c.h.bf16 %v2218_v5 }
  0x6a   : > { %v1059_v2 = vsel %vm974_vm0, %v2038_v63, 0.0  ;;  %v1056_v3 = vsel %vm974_vm0, %v2035_v0, 0.0  ;;  %v2042_v8 = vunpack.c.l.bf16 %v2218_v5  ;;  %v1071_v9 = vsel %vm974_vm0, %v2046_v6, 0.0 }
  0x6b   : > { %v1068_v10 = vsel %vm974_vm0, %v2043_v7, 0.0  ;;  %v2071_v46 = vunpack.c.h.bf16 %v2225_v34  ;;  %v1480_v47 = vlaneseq  ;;  %v2163_v56 = vunpack.c.h.bf16 %v2248_v53 }
  0x6c   : > { %v1065_v11 = vsel %vm974_vm0, %v2042_v8, 0.0  ;;  %v2159_v61 = vunpack.c.h.bf16 %v2247_v42  ;;  %vm1493_vm3 = vcmask 261312   ;;  %vm1497_vm4 = vcmask 326912  }
  0x6d   : > { %v1110_v54 = vsel %vm974_vm0, %v2071_v46, 0.0  ;;  %v2668_v55 = vand.u32 127, %v1480_v47  ;;  %vm1501_vm5 = vcmask 392512   ;;  %vm1505_vm6 = vcmask 458112  }
  0x6e   : > { %1000 = vadd.xlane.f32.xlu2 %v999_v13  ;;  %997 = vadd.xlane.f32.xlu1 %v996_v14  ;;  %v2051_v13 = vunpack.c.h.bf16 %v2220_v12  ;;  %v2050_v14 = vunpack.c.l.bf16 %v2220_v12  ;;  %vm1509_vm7 = vcmask 523712   ;;  %vm1513_vm8 = vcmask 589312  }
  0x6f   : > { %994 = vadd.xlane.f32.xlu0 %v993_v15  ;;  %v2047_v15 = vunpack.c.h.bf16 %v2219_v4  ;;  %v2671_v57 = vadd.s32 4294967272, %v2668_v55  ;;  %v2680_v62 = vadd.s32 4294967256, %v2668_v55  ;;  %vm1517_vm9 = vcmask 654912  }
  0x70   : > { %v1080_v16 = vsel %vm974_vm0, %v2051_v13, 0.0  ;;  %v1077_v17 = vsel %vm974_vm0, %v2050_v14, 0.0  ;;  %v2696_v13 = vadd.s32 4294967232, %v2668_v55  ;;  %v2249_v14 = vld [vmem:[%s2588_s17 + $0x170] sm:$0xff]   ;;  %vm1521_vm10 = vcmask 720512  }
  0x71   : > { %v1074_v18 = vsel %vm974_vm0, %v2047_v15, 0.0  ;;  %vm1525_vm11 = vcmask 786112   ;;  %vm1529_vm12 = vcmask 851712   ;;  %vm1533_vm13 = vcmask 917312  }
  0x72   : > { %vm1537_vm14 = vcmask 982912   ;;  %vm1541_vm15 = vcmask 1048512  }
  0x76   : > { %1009 = vadd.xlane.f32.xlu2 %v1008_v20  ;;  %1006 = vadd.xlane.f32.xlu1 %v1005_v21  ;;  %v2221_v20 = vld [vmem:[%s2588_s17 + $0x90] sm:$0xff]   ;;  %v2058_v21 = vunpack.c.l.bf16 %v2222_v19 }
  0x77   : > { %1003 = vadd.xlane.f32.xlu0 %v1002_v22  ;;  %v2055_v22 = vunpack.c.h.bf16 %v2221_v20  ;;  %v2054_v23 = vunpack.c.l.bf16 %v2221_v20 }
  0x78   : > { %v1089_v24 = vsel %vm974_vm0, %v2058_v21, 0.0 }
  0x79   : > { %v1086_v25 = vsel %vm974_vm0, %v2055_v22, 0.0  ;;  %v1083_v26 = vsel %vm974_vm0, %v2054_v23, 0.0  ;;  %v2166_v23 = vunpack.c.l.bf16 %v2249_v14 }
  0x7e   : > { %1018 = vadd.xlane.f32.xlu2 %v1017_v28  ;;  %1015 = vadd.xlane.f32.xlu1 %v1014_v29  ;;  %v2063_v28 = vunpack.c.h.bf16 %v2223_v27  ;;  %v2062_v29 = vunpack.c.l.bf16 %v2223_v27 }
  0x7f   : > { %1012 = vadd.xlane.f32.xlu0 %v1011_v30  ;;  %v2059_v30 = vunpack.c.h.bf16 %v2222_v19  ;;  %v2706_v19 = vadd.s32 4294967248, %v2668_v55 }
  0x80   : > { %v1098_v31 = vsel %vm974_vm0, %v2063_v28, 0.0  ;;  %v1095_v32 = vsel %vm974_vm0, %v2062_v29, 0.0 }
  0x81   : > { %v1092_v33 = vsel %vm974_vm0, %v2059_v30, 0.0 }
  0x86   : > { %1027 = vadd.xlane.f32.xlu2 %v1026_v35  ;;  %1024 = vadd.xlane.f32.xlu1 %v1023_v36  ;;  %v2224_v35 = vld [vmem:[%s2588_s17 + $0xa8] sm:$0xff]   ;;  %v2070_v36 = vunpack.c.l.bf16 %v2225_v34  ;;  %v2239_v34 = vld [vmem:[%s2588_s17 + $0x120] sm:$0xff]  }
  0x87   : > { %1021 = vadd.xlane.f32.xlu0 %v1020_v37  ;;  %v2067_v37 = vunpack.c.h.bf16 %v2224_v35  ;;  %v2066_v38 = vunpack.c.l.bf16 %v2224_v35 }
  0x88   : > { %v1107_v39 = vsel %vm974_vm0, %v2070_v36, 0.0 }
  0x89   : > { %v1104_v40 = vsel %vm974_vm0, %v2067_v37, 0.0  ;;  %v1101_v41 = vsel %vm974_vm0, %v2066_v38, 0.0  ;;  %v2720_v37 = vadd.s32 4294967208, %v2668_v55  ;;  %v2723_v38 = vadd.s32 4294967216, %v2668_v55 }
  0x8e   : > { %1036 = vadd.xlane.f32.xlu2 %v1035_v43  ;;  %1033 = vadd.xlane.f32.xlu1 %v1032_v44  ;;  %v2661_v43 = vld [vmem:[%s2588_s17 + $0xb8] sm:$0xff]   ;;  %v2158_v44 = vunpack.c.l.bf16 %v2247_v42  ;;  %v2127_v42 = vunpack.c.h.bf16 %v2239_v34 }
  0x8f   : > { %1030 = vadd.xlane.f32.xlu0 %v1029_v45  ;;  %v2074_v45 = vunpack.c.l.bf16 %v2661_v43 }
  0x96   : > { %1045 = vadd.xlane.f32.xlu2 %v1044_v50  ;;  %1042 = vadd.xlane.f32.xlu1 %v1041_v51  ;;  %v1239_v51 = vsel %vm974_vm0, %v2158_v44, 0.0  ;;  %v2126_v44 = vunpack.c.l.bf16 %v2239_v34 }
  0x97   : > { %1039 = vadd.xlane.f32.xlu0 %v1038_v52  ;;  %v1113_v52 = vsel %vm974_vm0, %v2074_v45, 0.0 }
  0x9e   : > { %1054 = vadd.xlane.f32.xlu2 %v1053_v58  ;;  %1051 = vadd.xlane.f32.xlu1 %v1050_v59  ;;  %v2674_v58 = vadd.s32 4294967288, %v2668_v55  ;;  %v2162_v59 = vunpack.c.l.bf16 %v2248_v53  ;;  %v1191_v53 = vsel %vm974_vm0, %v2126_v44, 0.0 }
  0x9f   : > { %1048 = vadd.xlane.f32.xlu0 %v1047_v60  ;;  %v2677_v60 = vadd.s32 4294967280, %v2668_v55 }
  0xa0   : > { %v1245_v7 = vsel %vm974_vm0, %v2162_v59, 0.0 }
  0xa6   : > { %1063 = vadd.xlane.f32.xlu2 %v1062_v1  ;;  %1060 = vadd.xlane.f32.xlu1 %v1059_v2  ;;  %v2683_v1 = vadd.s32 4294967264, %v2668_v55 }
  0xa7   : > { %1057 = vadd.xlane.f32.xlu0 %v1056_v3  ;;  %v1248_v3 = vsel %vm974_vm0, %v2163_v56, 0.0  ;;  %v2240_v56 = vld [vmem:[%s2588_s17 + $0x128] sm:$0xff]  }
  0xae   : > { %1072 = vadd.xlane.f32.xlu2 %v1071_v9  ;;  %1069 = vadd.xlane.f32.xlu1 %v1068_v10  ;;  %v1242_v9 = vsel %vm974_vm0, %v2159_v61, 0.0  ;;  %v2231_v10 = vld [vmem:[%s2588_s17 + $0xe0] sm:$0xff]   ;;  %v2232_v61 = vld [vmem:[%s2588_s17 + $0xe8] sm:$0xff]  }
  0xaf   : > { %1066 = vadd.xlane.f32.xlu0 %v1065_v11  ;;  %v2095_v20 = vunpack.c.h.bf16 %v2231_v10  ;;  %v2094_v21 = vunpack.c.l.bf16 %v2231_v10 }
  0xb6   : > { %1081 = vadd.xlane.f32.xlu2 %v1080_v16  ;;  %1078 = vadd.xlane.f32.xlu1 %v1077_v17  ;;  %v2702_v17 = vadd.s32 4294967240, %v2668_v55 }
  0xb7   : > { %1075 = vadd.xlane.f32.xlu0 %v1074_v18 }
  0xbe   : > { %1090 = vadd.xlane.f32.xlu2 %v1089_v24  ;;  %1087 = vadd.xlane.f32.xlu1 %v1086_v25 }
  0xbf   : > { %1084 = vadd.xlane.f32.xlu0 %v1083_v26 }
  0xc6   : > { %1099 = vadd.xlane.f32.xlu2 %v1098_v31  ;;  %1096 = vadd.xlane.f32.xlu1 %v1095_v32  ;;  %v1146_v31 = vsel %vm974_vm0, %v2095_v20, 0.0  ;;  %v1143_v32 = vsel %vm974_vm0, %v2094_v21, 0.0 }
  0xc7   : > { %1093 = vadd.xlane.f32.xlu0 %v1092_v33  ;;  %v1251_v33 = vsel %vm974_vm0, %v2166_v23, 0.0 }
  0xce   : > { %1108 = vadd.xlane.f32.xlu2 %v1107_v39  ;;  %1105 = vadd.xlane.f32.xlu1 %v1104_v40  ;;  %v2727_v40 = vadd.s32 4294967224, %v2668_v55 }
  0xcf   : > { %1102 = vadd.xlane.f32.xlu0 %v1101_v41  ;;  %v2167_v41 = vunpack.c.h.bf16 %v2249_v14 }
  0xd1   : > { %v989_v48 = vpop.xlane.xlu2 %988  ;;  %v983_v49 = vpop.xlane.xlu1 %982 }
  0xd2   : > { %v977_v50 = vpop.xlane.xlu0 %976  ;;  %v1488_v8 = vperm.slane %v983_v49, %v2677_v60  ;;  %v1496_v15 = vperm.slane %v989_v48, %v2683_v1 }
  0xd3   : > { %v1482_v4 = vperm.slane %v977_v50, %v2668_v55 }
  0xd6   : > { %1240 = vadd.xlane.f32.xlu2 %v1239_v51  ;;  %1114 = vadd.xlane.f32.xlu1 %v1113_v52  ;;  %v1254_v51 = vsel %vm974_vm0, %v2167_v41, 0.0  ;;  %v1194_v52 = vsel %vm974_vm0, %v2127_v42, 0.0  ;;  %v2241_v41 = vld [vmem:[%s2588_s17 + $0x130] sm:$0xff]  }
  0xd7   : > { %1111 = vadd.xlane.f32.xlu0 %v1110_v54  ;;  %v2250_v54 = vld [vmem:[%s2588_s17 + $0x178] sm:$0xff]   ;;  %v2233_v42 = vld [vmem:[%s2588_s17 + $0xf0] sm:$0xff]  }
  0xd8   : > { %v2171_v23 = vunpack.c.h.bf16 %v2250_v54 }
  0xd9   : > { %v992_v63 = vpop.xlane.xlu2 %991  ;;  %v986_v0 = vpop.xlane.xlu1 %985 }
  0xda   : > { %v980_v2 = vpop.xlane.xlu0 %979  ;;  %v1492_v5 = vperm.slane %v986_v0, %v2671_v57  ;;  %v1500_v11 = vperm.slane %v992_v63, %v2680_v62  ;;  %v2741_v0 = vadd.s32 4294967184, %v2668_v55 }
  0xdb   : > { %v1484_v6 = vperm.slane %v980_v2, %v2674_v58  ;;  %v2744_v2 = vadd.s32 4294967192, %v2668_v55 }
  0xdd   : > { %v1486_v12 = vsel %vm1485_vm1, %v1484_v6, %v1482_v4  ;;  %v2748_v4 = vadd.s32 4294967200, %v2668_v55  ;;  %v2130_v6 = vunpack.c.l.bf16 %v2240_v56 }
  0xde   : > { %v1490_v16 = vsel %vm1489_vm2, %v1488_v8, %v1486_v12  ;;  %1249 = vadd.xlane.f32.xlu2 %v1248_v3  ;;  %1246 = vadd.xlane.f32.xlu1 %v1245_v7  ;;  %v2098_v7 = vunpack.c.l.bf16 %v2232_v61 }
  0xdf   : > { %v1494_v18 = vsel %vm1493_vm3, %v1492_v5, %v1490_v16  ;;  %1243 = vadd.xlane.f32.xlu0 %v1242_v9  ;;  %v2170_v5 = vunpack.c.l.bf16 %v2250_v54  ;;  %v1197_v16 = vsel %vm974_vm0, %v2130_v6, 0.0  ;;  %v2135_v6 = vunpack.c.h.bf16 %v2241_v41 }
  0xe0   : > { %v1498_v22 = vsel %vm1497_vm4, %v1496_v15, %v1494_v18  ;;  %v1149_v18 = vsel %vm974_vm0, %v2098_v7, 0.0  ;;  %v2103_v7 = vunpack.c.h.bf16 %v2233_v42 }
  0xe1   : > { %v1001_v24 = vpop.xlane.xlu2 %1000  ;;  %v998_v25 = vpop.xlane.xlu1 %997  ;;  %v1502_v26 = vsel %vm1501_vm5, %v1500_v11, %v1498_v22  ;;  %v1257_v15 = vsel %vm974_vm0, %v2170_v5, 0.0  ;;  %v2759_v22 = vadd.s32 4294967176, %v2668_v55 }
  0xe2   : > { %v1508_v27 = vperm.slane %v998_v25, %v2702_v17  ;;  %v995_v28 = vpop.xlane.xlu0 %994  ;;  %v1512_v29 = vperm.slane %v1001_v24, %v2696_v13  ;;  %v2131_v24 = vunpack.c.h.bf16 %v2240_v56 }
  0xe3   : > { %v1504_v30 = vperm.slane %v995_v28, %v2706_v19 }
  0xe4   : > { %v1200_v34 = vsel %vm974_vm0, %v2131_v24, 0.0  ;;  %v2234_v24 = vld [vmem:[%s2588_s17 + $0xf8] sm:$0xff]  }
  0xe5   : > { %v1506_v35 = vsel %vm1505_vm6, %v1504_v30, %v1502_v26  ;;  %v2099_v26 = vunpack.c.h.bf16 %v2232_v61 }
  0xe6   : > { %v1510_v36 = vsel %vm1509_vm7, %v1508_v27, %v1506_v35  ;;  %1147 = vadd.xlane.f32.xlu2 %v1146_v31  ;;  %1144 = vadd.xlane.f32.xlu1 %v1143_v32 }
  0xe7   : > { %1252 = vadd.xlane.f32.xlu0 %v1251_v33  ;;  %v1514_v39 = vsel %vm1513_vm8, %v1512_v29, %v1510_v36  ;;  %v1260_v33 = vsel %vm974_vm0, %v2171_v23, 0.0  ;;  %v1152_v36 = vsel %vm974_vm0, %v2099_v26, 0.0 }
  0xe9   : > { %v1010_v45 = vpop.xlane.xlu2 %1009  ;;  %v1007_v46 = vpop.xlane.xlu1 %1006 }
  0xea   : > { %v1520_v47 = vperm.slane %v1007_v46, %v2723_v38  ;;  %v1004_v48 = vpop.xlane.xlu0 %1003  ;;  %v1524_v49 = vperm.slane %v1010_v45, %v2720_v37  ;;  %v2134_v46 = vunpack.c.l.bf16 %v2241_v41 }
  0xeb   : > { %v1516_v50 = vperm.slane %v1004_v48, %v2727_v40 }
  0xec   : > { %v1203_v56 = vsel %vm974_vm0, %v2134_v46, 0.0 }
  0xed   : > { %v1518_v59 = vsel %vm1517_vm9, %v1516_v50, %v1514_v39  ;;  %v2251_v39 = vld [vmem:[%s2588_s17 + $0x180] sm:$0xff]  }
  0xee   : > { %v1522_v63 = vsel %vm1521_vm10, %v1520_v47, %v1518_v59  ;;  %1255 = vadd.xlane.f32.xlu2 %v1254_v51  ;;  %1195 = vadd.xlane.f32.xlu1 %v1194_v52  ;;  %v2174_v45 = vunpack.c.l.bf16 %v2251_v39  ;;  %v2102_v47 = vunpack.c.l.bf16 %v2233_v42  ;;  %v2175_v5 = vunpack.c.h.bf16 %v2251_v39  ;;  %v2227_v42 = vld [vmem:[%s2588_s17 + $0xc0] sm:$0xff]  }
  0xef   : > { %1192 = vadd.xlane.f32.xlu0 %v1191_v53  ;;  %v1526_v3 = vsel %vm1525_vm11, %v1524_v49, %v1522_v63 }
  0xf0   : > { %v1263_v54 = vsel %vm974_vm0, %v2174_v45, 0.0  ;;  %v1155_v59 = vsel %vm974_vm0, %v2102_v47, 0.0 }
  0xf1   : > { %v1019_v8 = vpop.xlane.xlu2 %1018  ;;  %v1016_v9 = vpop.xlane.xlu1 %1015 }
  0xf2   : > { %v1532_v10 = vperm.slane %v1016_v9, %v2744_v2  ;;  %v1013_v11 = vpop.xlane.xlu0 %1012  ;;  %v1536_v12 = vperm.slane %v1019_v8, %v2741_v0 }
  0xf3   : > { %v1528_v14 = vperm.slane %v1013_v11, %v2748_v4 }
  0xf5   : > { %v1530_v20 = vsel %vm1529_vm12, %v1528_v14, %v1526_v3 }
  0xf6   : > { %1258 = vadd.xlane.f32.xlu2 %v1257_v15  ;;  %1198 = vadd.xlane.f32.xlu1 %v1197_v16  ;;  %v1534_v21 = vsel %vm1533_vm13, %v1532_v10, %v1530_v20  ;;  %v1266_v15 = vsel %vm974_vm0, %v2175_v5, 0.0  ;;  %v1206_v16 = vsel %vm974_vm0, %v2135_v6, 0.0  ;;  %v2252_v20 = vld [vmem:[%s2588_s17 + $0x188] sm:$0xff]   ;;  %v2255_v5 = vld [vmem:[%s2588_s17 + $0x1a0] sm:$0xff]  }
  0xf7   : > { %1150 = vadd.xlane.f32.xlu0 %v1149_v18  ;;  %v1538_v25 = vsel %vm1537_vm14, %v1536_v12, %v1534_v21  ;;  %v1158_v18 = vsel %vm974_vm0, %v2103_v7, 0.0  ;;  %v2242_v21 = vld [vmem:[%s2588_s17 + $0x138] sm:$0xff]  }
  0xf9   : > { %v1028_v27 = vpop.xlane.xlu2 %1027  ;;  %v1025_v28 = vpop.xlane.xlu1 %1024 }
  0xfa   : > { %v1544_v29 = vperm.slane %v1028_v27, %v2674_v58  ;;  %v1543_v30 = vperm.slane %v1025_v28, %v2668_v55  ;;  %v1022_v31 = vpop.xlane.xlu0 %1021  ;;  %v2178_v27 = vunpack.c.l.bf16 %v2252_v20  ;;  %v2138_v28 = vunpack.c.l.bf16 %v2242_v21 }
  0xfb   : > { %v1540_v32 = vperm.slane %v1022_v31, %v2759_v22 }
  0xfc   : > { %v1545_v35 = vsel %vm1485_vm1, %v1544_v29, %v1543_v30  ;;  %v2106_v29 = vunpack.c.l.bf16 %v2234_v24  ;;  %v1209_v39 = vsel %vm974_vm0, %v2138_v28, 0.0 }
  0xfd   : > { %v2773_v44 = vsel %vm1541_vm15, %v1540_v32, %v1538_v25 }
  0xfe   : > { %1261 = vadd.xlane.f32.xlu2 %v1260_v33  ;;  %1201 = vadd.xlane.f32.xlu1 %v1200_v34  ;;  %v1161_v41 = vsel %vm974_vm0, %v2106_v29, 0.0 }
  0xff   : > { %1153 = vadd.xlane.f32.xlu0 %v1152_v36  ;;  %v1269_v36 = vsel %vm974_vm0, %v2178_v27, 0.0  ;;  %v2228_v27 = vld [vmem:[%s2588_s17 + $0xc8] sm:$0xff]  }
 0x100   : > { %v2082_v29 = vunpack.c.l.bf16 %v2228_v27 }
 0x101   : > { %v1037_v48 = vpop.xlane.xlu2 %1036  ;;  %v1034_v49 = vpop.xlane.xlu1 %1033 }
 0x102   : > { %v1548_v50 = vperm.slane %v1034_v49, %v2671_v57  ;;  %v1031_v51 = vpop.xlane.xlu0 %1030  ;;  %v1550_v52 = vperm.slane %v1037_v48, %v2683_v1  ;;  %v2107_v48 = vunpack.c.h.bf16 %v2234_v24  ;;  %v2079_v49 = vunpack.c.h.bf16 %v2227_v42 }
 0x103   : > { %v1546_v53 = vperm.slane %v1031_v51, %v2677_v60 }
 0x105   : > { %v1547_v61 = vsel %vm1489_vm2, %v1546_v53, %v1545_v35 }
 0x106   : > { %v1549_v63 = vsel %vm1493_vm3, %v1548_v50, %v1547_v61  ;;  %1264 = vadd.xlane.f32.xlu2 %v1263_v54  ;;  %1204 = vadd.xlane.f32.xlu1 %v1203_v56  ;;  %v2078_v50 = vunpack.c.l.bf16 %v2227_v42  ;;  %v1164_v61 = vsel %vm974_vm0, %v2107_v48, 0.0  ;;  %v1125_v42 = vsel %vm974_vm0, %v2082_v29, 0.0 }
 0x107   : > { %1156 = vadd.xlane.f32.xlu0 %v1155_v59  ;;  %v1551_v3 = vsel %vm1497_vm4, %v1550_v52, %v1549_v63  ;;  %v1122_v63 = vsel %vm974_vm0, %v2079_v49, 0.0  ;;  %v2243_v49 = vld [vmem:[%s2588_s17 + $0x140] sm:$0xff]  }
 0x109   : > { %v1046_v8 = vpop.xlane.xlu2 %1045  ;;  %v1043_v9 = vpop.xlane.xlu1 %1042 }
 0x10a   : > { %v1554_v10 = vperm.slane %v1043_v9, %v2706_v19  ;;  %v1040_v11 = vpop.xlane.xlu0 %1039  ;;  %v1556_v12 = vperm.slane %v1046_v8, %v2702_v17  ;;  %v2190_v8 = vunpack.c.l.bf16 %v2255_v5  ;;  %v2179_v9 = vunpack.c.h.bf16 %v2252_v20 }
 0x10b   : > { %v1552_v14 = vperm.slane %v1040_v11, %v2680_v62  ;;  %v2139_v11 = vunpack.c.h.bf16 %v2242_v21 }
 0x10c   : > { %v1272_v24 = vsel %vm974_vm0, %v2179_v9, 0.0 }
 0x10d   : > { %v1553_v23 = vsel %vm1501_vm5, %v1552_v14, %v1551_v3  ;;  %v1119_v3 = vsel %vm974_vm0, %v2078_v50, 0.0 }
 0x10e   : > { %v1555_v25 = vsel %vm1505_vm6, %v1554_v10, %v1553_v23  ;;  %1267 = vadd.xlane.f32.xlu2 %v1266_v15  ;;  %1207 = vadd.xlane.f32.xlu1 %v1206_v16  ;;  %v1287_v23 = vsel %vm974_vm0, %v2190_v8, 0.0 }
 0x10f   : > { %1159 = vadd.xlane.f32.xlu0 %v1158_v18  ;;  %v1557_v26 = vsel %vm1509_vm7, %v1556_v12, %v1555_v25  ;;  %v1212_v25 = vsel %vm974_vm0, %v2139_v11, 0.0 }
 0x111   : > { %v1055_v30 = vpop.xlane.xlu2 %1054  ;;  %v1052_v31 = vpop.xlane.xlu1 %1051 }
 0x112   : > { %v1560_v32 = vperm.slane %v1052_v31, %v2727_v40  ;;  %v1049_v33 = vpop.xlane.xlu0 %1048  ;;  %v1562_v34 = vperm.slane %v1055_v30, %v2723_v38  ;;  %v2191_v30 = vunpack.c.h.bf16 %v2255_v5 }
 0x113   : > { %v1558_v35 = vperm.slane %v1049_v33, %v2696_v13 }
 0x115   : > { %v1559_v45 = vsel %vm1513_vm8, %v1558_v35, %v1557_v26  ;;  %v2235_v26 = vld [vmem:[%s2588_s17 + $0x100] sm:$0xff]  }
 0x116   : > { %v1561_v46 = vsel %vm1517_vm9, %v1560_v32, %v1559_v45  ;;  %1270 = vadd.xlane.f32.xlu2 %v1269_v36  ;;  %1210 = vadd.xlane.f32.xlu1 %v1209_v39  ;;  %v2110_v28 = vunpack.c.l.bf16 %v2235_v26  ;;  %v1290_v45 = vsel %vm974_vm0, %v2191_v30, 0.0 }
 0x117   : > { %1162 = vadd.xlane.f32.xlu0 %v1161_v41  ;;  %v1563_v47 = vsel %vm1521_vm10, %v1562_v34, %v1561_v46  ;;  %v2256_v46 = vld [vmem:[%s2588_s17 + $0x1a8] sm:$0xff]  }
 0x118   : > { %v1167_v41 = vsel %vm974_vm0, %v2110_v28, 0.0 }
 0x119   : > { %v1064_v51 = vpop.xlane.xlu2 %1063  ;;  %v1061_v52 = vpop.xlane.xlu1 %1060 }
 0x11a   : > { %v1566_v53 = vperm.slane %v1061_v52, %v2748_v4  ;;  %v1058_v54 = vpop.xlane.xlu0 %1057  ;;  %v1568_v56 = vperm.slane %v1064_v51, %v2744_v2  ;;  %v2194_v52 = vunpack.c.l.bf16 %v2256_v46 }
 0x11b   : > { %v1564_v59 = vperm.slane %v1058_v54, %v2720_v37  ;;  %v2142_v54 = vunpack.c.l.bf16 %v2243_v49 }
 0x11d   : > { %v1565_v6 = vsel %vm1525_vm11, %v1564_v59, %v1563_v47  ;;  %v2253_v47 = vld [vmem:[%s2588_s17 + $0x190] sm:$0xff]   ;;  %v1215_v8 = vsel %vm974_vm0, %v2142_v54, 0.0 }
 0x11e   : > { %v1567_v7 = vsel %vm1529_vm12, %v1566_v53, %v1565_v6  ;;  %1165 = vadd.xlane.f32.xlu2 %v1164_v61  ;;  %1123 = vadd.xlane.f32.xlu1 %v1122_v63  ;;  %v2182_v53 = vunpack.c.l.bf16 %v2253_v47  ;;  %v1293_v6 = vsel %vm974_vm0, %v2194_v52, 0.0  ;;  %v2254_v52 = vld [vmem:[%s2588_s17 + $0x198] sm:$0xff]  }
 0x11f   : > { %1120 = vadd.xlane.f32.xlu0 %v1119_v3  ;;  %v1569_v10 = vsel %vm1533_vm13, %v1568_v56, %v1567_v7 }
 0x120   : > { %v1275_v7 = vsel %vm974_vm0, %v2182_v53, 0.0  ;;  %v2244_v53 = vld [vmem:[%s2588_s17 + $0x148] sm:$0xff]  }
 0x121   : > { %v1073_v12 = vpop.xlane.xlu2 %1072  ;;  %v1070_v14 = vpop.xlane.xlu1 %1069 }
 0x122   : > { %v1572_v15 = vperm.slane %v1070_v14, %v2759_v22  ;;  %v1067_v16 = vpop.xlane.xlu0 %1066  ;;  %v1574_v31 = vperm.slane %v1073_v12, %v2668_v55  ;;  %v2143_v12 = vunpack.c.h.bf16 %v2243_v49  ;;  %v2111_v14 = vunpack.c.h.bf16 %v2235_v26 }
 0x123   : > { %v1570_v18 = vperm.slane %v1067_v16, %v2741_v0 }
 0x124   : > { %v1218_v28 = vsel %vm974_vm0, %v2143_v12, 0.0  ;;  %v1170_v29 = vsel %vm974_vm0, %v2111_v14, 0.0  ;;  %v2257_v14 = vld [vmem:[%s2588_s17 + $0x1b0] sm:$0xff]  }
 0x125   : > { %v1571_v20 = vsel %vm1537_vm14, %v1570_v18, %v1569_v10 }
 0x126   : > { %1288 = vadd.xlane.f32.xlu2 %v1287_v23  ;;  %1273 = vadd.xlane.f32.xlu1 %v1272_v24  ;;  %v2825_v21 = vsel %vm1541_vm15, %v1572_v15, %v1571_v20  ;;  %v2083_v15 = vunpack.c.h.bf16 %v2228_v27 }
 0x127   : > { %1213 = vadd.xlane.f32.xlu0 %v1212_v25 }
 0x128   : > { %v1128_v30 = vsel %vm974_vm0, %v2083_v15, 0.0 }
 0x129   : > { %v1082_v32 = vpop.xlane.xlu2 %1081  ;;  %v1079_v33 = vpop.xlane.xlu1 %1078 }
 0x12a   : > { %v1577_v34 = vperm.slane %v1079_v33, %v2677_v60  ;;  %v1076_v35 = vpop.xlane.xlu0 %1075  ;;  %v1579_v36 = vperm.slane %v1082_v32, %v2671_v57 }
 0x12b   : > { %v1575_v39 = vperm.slane %v1076_v35, %v2674_v58  ;;  %v2183_v35 = vunpack.c.h.bf16 %v2253_v47  ;;  %v2236_v47 = vld [vmem:[%s2588_s17 + $0x108] sm:$0xff]  }
 0x12d   : > { %v1576_v48 = vsel %vm1485_vm1, %v1575_v39, %v1574_v31  ;;  %v2229_v31 = vld [vmem:[%s2588_s17 + $0xd0] sm:$0xff]  }
 0x12e   : > { %v1578_v50 = vsel %vm1489_vm2, %v1577_v34, %v1576_v48  ;;  %1168 = vadd.xlane.f32.xlu2 %v1167_v41  ;;  %1126 = vadd.xlane.f32.xlu1 %v1125_v42  ;;  %v2086_v33 = vunpack.c.l.bf16 %v2229_v31  ;;  %v2195_v34 = vunpack.c.h.bf16 %v2256_v46 }
 0x12f   : > { %1291 = vadd.xlane.f32.xlu0 %v1290_v45  ;;  %v1580_v51 = vsel %vm1493_vm3, %v1579_v36, %v1578_v50 }
 0x130   : > { %v1131_v49 = vsel %vm974_vm0, %v2086_v33, 0.0  ;;  %v1296_v50 = vsel %vm974_vm0, %v2195_v34, 0.0 }
 0x131   : > { %v1091_v56 = vpop.xlane.xlu2 %1090  ;;  %v1088_v59 = vpop.xlane.xlu1 %1087 }
 0x132   : > { %v1583_v61 = vperm.slane %v1088_v59, %v2680_v62  ;;  %v1085_v63 = vpop.xlane.xlu0 %1084  ;;  %v1585_v3 = vperm.slane %v1091_v56, %v2706_v19  ;;  %v2186_v59 = vunpack.c.l.bf16 %v2254_v52 }
 0x133   : > { %v1581_v5 = vperm.slane %v1085_v63, %v2683_v1  ;;  %v2114_v63 = vunpack.c.l.bf16 %v2236_v47 }
 0x135   : > { %v1582_v9 = vsel %vm1497_vm4, %v1581_v5, %v1580_v51  ;;  %v1278_v51 = vsel %vm974_vm0, %v2183_v35, 0.0  ;;  %v2187_v35 = vunpack.c.h.bf16 %v2254_v52  ;;  %v2237_v52 = vld [vmem:[%s2588_s17 + $0x110] sm:$0xff]  }
 0x136   : > { %v1584_v10 = vsel %vm1501_vm5, %v1583_v61, %v1582_v9  ;;  %1294 = vadd.xlane.f32.xlu2 %v1293_v6  ;;  %1276 = vadd.xlane.f32.xlu1 %v1275_v7  ;;  %v2146_v61 = vunpack.c.l.bf16 %v2244_v53  ;;  %v1281_v9 = vsel %vm974_vm0, %v2186_v59, 0.0  ;;  %v2118_v59 = vunpack.c.l.bf16 %v2237_v52 }
 0x137   : > { %1216 = vadd.xlane.f32.xlu0 %v1215_v8  ;;  %v1586_v11 = vsel %vm1505_vm6, %v1585_v3, %v1584_v10 }
 0x138   : > { %v1221_v10 = vsel %vm974_vm0, %v2146_v61, 0.0 }
 0x139   : > { %v1100_v16 = vpop.xlane.xlu2 %1099  ;;  %v1097_v18 = vpop.xlane.xlu1 %1096 }
 0x13a   : > { %v1589_v23 = vperm.slane %v1097_v18, %v2696_v13  ;;  %v1094_v24 = vpop.xlane.xlu0 %1093  ;;  %v1591_v25 = vperm.slane %v1100_v16, %v2727_v40  ;;  %v2087_v16 = vunpack.c.h.bf16 %v2229_v31  ;;  %v2075_v18 = vunpack.c.h.bf16 %v2661_v43 }
 0x13b   : > { %v1587_v20 = vperm.slane %v1094_v24, %v2702_v17 }
 0x13d   : > { %v1588_v32 = vsel %vm1509_vm7, %v1587_v20, %v1586_v11  ;;  %v1173_v11 = vsel %vm974_vm0, %v2114_v63, 0.0  ;;  %v2199_v63 = vunpack.c.h.bf16 %v2257_v14 }
 0x13e   : > { %v1590_v26 = vsel %vm1513_vm8, %v1589_v23, %v1588_v32  ;;  %1219 = vadd.xlane.f32.xlu2 %v1218_v28  ;;  %1171 = vadd.xlane.f32.xlu1 %v1170_v29  ;;  %v2198_v23 = vunpack.c.l.bf16 %v2257_v14 }
 0x13f   : > { %1129 = vadd.xlane.f32.xlu0 %v1128_v30  ;;  %v1592_v27 = vsel %vm1517_vm9, %v1591_v25, %v1590_v26  ;;  %v1134_v26 = vsel %vm974_vm0, %v2087_v16, 0.0  ;;  %v1302_v16 = vsel %vm974_vm0, %v2199_v63, 0.0 }
 0x140   : > { %v1299_v31 = vsel %vm974_vm0, %v2198_v23, 0.0  ;;  %v2245_v23 = vld [vmem:[%s2588_s17 + $0x150] sm:$0xff]  }
 0x141   : > { %v1109_v36 = vpop.xlane.xlu2 %1108  ;;  %v1106_v39 = vpop.xlane.xlu1 %1105 }
 0x142   : > { %v1595_v41 = vperm.slane %v1106_v39, %v2720_v37  ;;  %v1103_v42 = vpop.xlane.xlu0 %1102  ;;  %v1597_v45 = vperm.slane %v1109_v36, %v2748_v4  ;;  %v2147_v36 = vunpack.c.h.bf16 %v2244_v53  ;;  %v2115_v39 = vunpack.c.h.bf16 %v2236_v47  ;;  %v2230_v53 = vld [vmem:[%s2588_s17 + $0xd8] sm:$0xff]  }
 0x143   : > { %v1593_v48 = vperm.slane %v1103_v42, %v2723_v38  ;;  %v2090_v61 = vunpack.c.l.bf16 %v2230_v53 }
 0x145   : > { %v1594_v46 = vsel %vm1521_vm10, %v1593_v48, %v1592_v27  ;;  %v1116_v27 = vsel %vm974_vm0, %v2075_v18, 0.0  ;;  %v2258_v18 = vld [vmem:[%s2588_s17 + $0x1b8] sm:$0xff]  }
 0x146   : > { %v1596_v54 = vsel %vm1525_vm11, %v1595_v41, %v1594_v46  ;;  %1132 = vadd.xlane.f32.xlu2 %v1131_v49  ;;  %1297 = vadd.xlane.f32.xlu1 %v1296_v50  ;;  %v1224_v46 = vsel %vm974_vm0, %v2147_v36, 0.0 }
 0x147   : > { %1279 = vadd.xlane.f32.xlu0 %v1278_v51  ;;  %v1598_v56 = vsel %vm1529_vm12, %v1597_v45, %v1596_v54  ;;  %v1284_v51 = vsel %vm974_vm0, %v2187_v35, 0.0 }
 0x149   : > { %v1241_v3 = vpop.xlane.xlu2 %1240  ;;  %v1115_v5 = vpop.xlane.xlu1 %1114 }
 0x14a   : > { %v1601_v6 = vperm.slane %v1115_v5, %v2741_v0  ;;  %v1112_v7 = vpop.xlane.xlu0 %1111  ;;  %v1682_v24 = vperm.slane %v1241_v3, %v2668_v55 }
 0x14b   : > { %v1599_v8 = vperm.slane %v1112_v7, %v2744_v2 }
 0x14d   : > { %v1600_v12 = vsel %vm1533_vm13, %v1599_v8, %v1598_v56  ;;  %v1176_v56 = vsel %vm974_vm0, %v2115_v39, 0.0  ;;  %v2203_v39 = vunpack.c.h.bf16 %v2258_v18 }
 0x14e   : > { %1282 = vadd.xlane.f32.xlu2 %v1281_v9  ;;  %1222 = vadd.xlane.f32.xlu1 %v1221_v10  ;;  %v2879_v15 = vsel %vm1537_vm14, %v1601_v6, %v1600_v12  ;;  %v1179_v10 = vsel %vm974_vm0, %v2118_v59, 0.0 }
 0x14f   : > { %1174 = vadd.xlane.f32.xlu0 %v1173_v11  ;;  %v1137_v11 = vsel %vm974_vm0, %v2090_v61, 0.0  ;;  %v2238_v61 = vld [vmem:[%s2588_s17 + $0x118] sm:$0xff]  }
 0x151   : > { %v1250_v25 = vpop.xlane.xlu2 %1249  ;;  %v1247_v20 = vpop.xlane.xlu1 %1246 }
 0x152   : > { %v1685_v28 = vperm.slane %v1247_v20, %v2677_v60  ;;  %v1244_v29 = vpop.xlane.xlu0 %1243  ;;  %v1687_v30 = vperm.slane %v1250_v25, %v2671_v57  ;;  %v2202_v25 = vunpack.c.l.bf16 %v2258_v18  ;;  %v2150_v20 = vunpack.c.l.bf16 %v2245_v23 }
 0x153   : > { %v1683_v32 = vperm.slane %v1244_v29, %v2674_v58 }
 0x154   : > { %v1227_v35 = vsel %vm974_vm0, %v2150_v20, 0.0 }
 0x155   : > { %v1684_v43 = vsel %vm1485_vm1, %v1683_v32, %v1682_v24  ;;  %v2091_v24 = vunpack.c.h.bf16 %v2230_v53 }
 0x156   : > { %v1686_v33 = vsel %vm1489_vm2, %v1685_v28, %v1684_v43  ;;  %1135 = vadd.xlane.f32.xlu2 %v1134_v26  ;;  %1117 = vadd.xlane.f32.xlu1 %v1116_v27  ;;  %v1305_v43 = vsel %vm974_vm0, %v2202_v25, 0.0 }
 0x157   : > { %1300 = vadd.xlane.f32.xlu0 %v1299_v31  ;;  %v1688_v34 = vsel %vm1493_vm3, %v1687_v30, %v1686_v33  ;;  %v1140_v31 = vsel %vm974_vm0, %v2091_v24, 0.0 }
 0x159   : > { %v1148_v41 = vpop.xlane.xlu2 %1147  ;;  %v1145_v42 = vpop.xlane.xlu1 %1144 }
 0x15a   : > { %v1621_v45 = vperm.slane %v1148_v41, %v2674_v58  ;;  %v1620_v48 = vperm.slane %v1145_v42, %v2668_v55  ;;  %v1253_v49 = vpop.xlane.xlu0 %1252  ;;  %v2151_v41 = vunpack.c.h.bf16 %v2245_v23  ;;  %v2119_v42 = vunpack.c.h.bf16 %v2237_v52  ;;  %v2246_v52 = vld [vmem:[%s2588_s17 + $0x158] sm:$0xff]  }
 0x15b   : > { %v1689_v50 = vperm.slane %v1253_v49, %v2683_v1  ;;  %v2155_v20 = vunpack.c.h.bf16 %v2246_v52 }
 0x15c   : > { %v1622_v54 = vsel %vm1485_vm1, %v1621_v45, %v1620_v48  ;;  %v1182_v59 = vsel %vm974_vm0, %v2119_v42, 0.0 }
 0x15d   : > { %v1690_v47 = vsel %vm1497_vm4, %v1689_v50, %v1688_v34 }
 0x15e   : > { %1285 = vadd.xlane.f32.xlu2 %v1284_v51  ;;  %1225 = vadd.xlane.f32.xlu1 %v1224_v46 }
 0x15f   : > { %1177 = vadd.xlane.f32.xlu0 %v1176_v56  ;;  %v1308_v56 = vsel %vm974_vm0, %v2203_v39, 0.0 }
 0x161   : > { %v1256_v3 = vpop.xlane.xlu2 %1255  ;;  %v1196_v5 = vpop.xlane.xlu1 %1195 }
 0x162   : > { %v1691_v6 = vperm.slane %v1256_v3, %v2680_v62  ;;  %v1652_v7 = vperm.slane %v1196_v5, %v2674_v58  ;;  %v1193_v8 = vpop.xlane.xlu0 %1192  ;;  %v2154_v3 = vunpack.c.l.bf16 %v2246_v52  ;;  %v2123_v5 = vunpack.c.h.bf16 %v2238_v61 }
 0x163   : > { %v1651_v9 = vperm.slane %v1193_v8, %v2668_v55 }
 0x164   : > { %v1692_v12 = vsel %vm1501_vm5, %v1691_v6, %v1690_v47  ;;  %v2122_v6 = vunpack.c.l.bf16 %v2238_v61  ;;  %v1188_v18 = vsel %vm974_vm0, %v2123_v5, 0.0  ;;  %v1359_v61 = vld [vmem:[%s2586_s16 + $0x178] sm:$0xff] }
 0x165   : > { %v1653_v14 = vsel %vm1485_vm1, %v1652_v7, %v1651_v9  ;;  %1779 = vmatpush.msra.mxu2 %v1359_v61  ;;  %v1343_v61 = vld [vmem:[%s2586_s16 + $0xf8] sm:$0xff] }
 0x166   : > { %1180 = vadd.xlane.f32.xlu2 %v1179_v10  ;;  %1138 = vadd.xlane.f32.xlu1 %v1137_v11  ;;  %v1185_v24 = vsel %vm974_vm0, %v2122_v6, 0.0 }
 0x167   : > { %1303 = vadd.xlane.f32.xlu0 %v1302_v16  ;;  %v1233_v16 = vsel %vm974_vm0, %v2154_v3, 0.0  ;;  %1759 = vmatpush.msra.mxu1 %v1343_v61  ;;  %v1315_v61 = vld [vmem:[%s2586_s16 + $0x18] sm:$0xff] }
 0x169   : > { %v1259_v28 = vpop.xlane.xlu2 %1258  ;;  %v1199_v29 = vpop.xlane.xlu1 %1198 }
 0x16a   : > { %v1693_v30 = vperm.slane %v1259_v28, %v2706_v19  ;;  %v1654_v32 = vperm.slane %v1199_v29, %v2677_v60  ;;  %v1151_v26 = vpop.xlane.xlu0 %1150 }
 0x16b   : > { %v1623_v27 = vperm.slane %v1151_v26, %v2677_v60 }
 0x16c   : > { %v1694_v33 = vsel %vm1505_vm6, %v1693_v30, %v1692_v12  ;;  %v1655_v34 = vsel %vm1489_vm2, %v1654_v32, %v1653_v14 }
 0x16d   : > { %v1624_v36 = vsel %vm1489_vm2, %v1623_v27, %v1622_v54  ;;  %v1230_v54 = vsel %vm974_vm0, %v2151_v41, 0.0 }
 0x16e   : > { %1141 = vadd.xlane.f32.xlu2 %v1140_v31  ;;  %1306 = vadd.xlane.f32.xlu1 %v1305_v43 }
 0x16f   : > { %1228 = vadd.xlane.f32.xlu0 %v1227_v35 }
 0x171   : > { %v1262_v45 = vpop.xlane.xlu2 %1261  ;;  %v1202_v48 = vpop.xlane.xlu1 %1201 }
 0x172   : > { %v1695_v49 = vperm.slane %v1262_v45, %v2702_v17  ;;  %v1656_v50 = vperm.slane %v1202_v48, %v2671_v57  ;;  %v1154_v51 = vpop.xlane.xlu0 %1153 }
 0x173   : > { %v1625_v46 = vperm.slane %v1154_v51, %v2671_v57 }
 0x174   : > { %v1696_v53 = vsel %vm1509_vm7, %v1695_v49, %v1694_v33  ;;  %v1657_v47 = vsel %vm1493_vm3, %v1656_v50, %v1655_v34  ;;  %v1236_v33 = vsel %vm974_vm0, %v2155_v20, 0.0  ;;  %v1353_v20 = vld [vmem:[%s2586_s16 + $0x148] sm:$0xff]  ;;  %vm1728_vm0 = vcmask 1041409  }
 0x175   : > { %v1626_v63 = vsel %vm1493_vm3, %v1625_v46, %v1624_v36 }
 0x176   : > { %1309 = vadd.xlane.f32.xlu2 %v1308_v56  ;;  %1231 = vadd.xlane.f32.xlu1 %v1230_v54 }
 0x177   : > { %1183 = vadd.xlane.f32.xlu0 %v1182_v59 }
 0x179   : > { %v1265_v7 = vpop.xlane.xlu2 %1264  ;;  %v1205_v8 = vpop.xlane.xlu1 %1204 }
 0x17a   : > { %v1697_v9 = vperm.slane %v1265_v7, %v2696_v13  ;;  %v1658_v10 = vperm.slane %v1205_v8, %v2683_v1  ;;  %v1157_v11 = vpop.xlane.xlu0 %1156  ;;  %v1357_v8 = vld [vmem:[%s2586_s16 + $0x168] sm:$0xff] }
 0x17b   : > { %v1627_v12 = vperm.slane %v1157_v11, %v2683_v1  ;;  %v1355_v11 = vld [vmem:[%s2586_s16 + $0x158] sm:$0xff] }
 0x17c   : > { %v1698_v14 = vsel %vm1513_vm8, %v1697_v9, %v1696_v53  ;;  %v1659_v23 = vsel %vm1497_vm4, %v1658_v10, %v1657_v47  ;;  %v1356_v10 = vld [vmem:[%s2586_s16 + $0x160] sm:$0xff] }
 0x17d   : > { %v1628_v25 = vsel %vm1497_vm4, %v1627_v12, %v1626_v63  ;;  %v1358_v63 = vld [vmem:[%s2586_s16 + $0x170] sm:$0xff] }
 0x17e   : > { %1234 = vadd.xlane.f32.xlu1 %v1233_v16  ;;  %1189 = vadd.xlane.f32.xlu2 %v1188_v18  ;;  %v1354_v12 = vld [vmem:[%s2586_s16 + $0x150] sm:$0xff] }
 0x17f   : > { %1186 = vadd.xlane.f32.xlu0 %v1185_v24  ;;  %1780 = vmatpush.msra.mxu2 %v1358_v63  ;;  %v1367_v63 = vld [vmem:[%s2586_s16 + $0x1b8] sm:$0xff] }
 0x180   : > { %1807 = vmatpush.msra.mxu3 %v1367_v63  ;;  %v1334_v63 = vld [vmem:[%s2586_s16 + $0xb0] sm:$0xff] }
 0x181   : > { %v1268_v28 = vpop.xlane.xlu2 %1267  ;;  %v1208_v29 = vpop.xlane.xlu1 %1207  ;;  %1781 = vmatpush.msra.mxu2 %v1357_v8 }
 0x182   : > { %v1699_v30 = vperm.slane %v1268_v28, %v2727_v40  ;;  %v1660_v32 = vperm.slane %v1208_v29, %v2680_v62  ;;  %v1160_v26 = vpop.xlane.xlu0 %1159 }
 0x183   : > { %v1629_v27 = vperm.slane %v1160_v26, %v2680_v62  ;;  %1782 = vmatpush.msra.mxu2 %v1356_v10 }
 0x184   : > { %v1700_v31 = vsel %vm1517_vm9, %v1699_v30, %v1698_v14  ;;  %v1661_v43 = vsel %vm1501_vm5, %v1660_v32, %v1659_v23  ;;  %v1351_v30 = vld [vmem:[%s2586_s16 + $0x138] sm:$0xff]  ;;  %v1350_v32 = vld [vmem:[%s2586_s16 + $0x130] sm:$0xff] }
 0x185   : > { %v1630_v34 = vsel %vm1501_vm5, %v1629_v27, %v1628_v25  ;;  %1783 = vmatpush.msra.mxu2 %v1355_v11  ;;  %v1322_v11 = vld [vmem:[%s2586_s16 + $0x50] sm:$0xff] }
 0x187   : > { %1237 = vadd.xlane.f32.xlu0 %v1236_v33  ;;  %1784 = vmatpush.msra.mxu2 %v1354_v12  ;;  %v1341_v12 = vld [vmem:[%s2586_s16 + $0xe8] sm:$0xff] }
 0x189   : > { %v1271_v35 = vpop.xlane.xlu2 %1270  ;;  %v1211_v36 = vpop.xlane.xlu1 %1210  ;;  %1785 = vmatpush.msra.mxu2 %v1353_v20  ;;  %v1339_v20 = vld [vmem:[%s2586_s16 + $0xd8] sm:$0xff] }
 0x18a   : > { %v1701_v39 = vperm.slane %v1271_v35, %v2723_v38  ;;  %v1662_v41 = vperm.slane %v1211_v36, %v2706_v19  ;;  %v1163_v42 = vpop.xlane.xlu0 %1162  ;;  %v1347_v35 = vld [vmem:[%s2586_s16 + $0x118] sm:$0xff]  ;;  %v1346_v36 = vld [vmem:[%s2586_s16 + $0x110] sm:$0xff] }
 0x18b   : > { %v1631_v45 = vperm.slane %v1163_v42, %v2706_v19 }
 0x18c   : > { %v2952_v48 = vsel %vm1521_vm10, %v1701_v39, %v1700_v31  ;;  %v1663_v49 = vsel %vm1505_vm6, %v1662_v41, %v1661_v43  ;;  %v1349_v43 = vld [vmem:[%s2586_s16 + $0x128] sm:$0xff] }
 0x18d   : > { %v1632_v50 = vsel %vm1505_vm6, %v1631_v45, %v1630_v34  ;;  %v1348_v34 = vld [vmem:[%s2586_s16 + $0x120] sm:$0xff] }
 0x191   : > { %v1166_v51 = vpop.xlane.xlu2 %1165  ;;  %v1124_v46 = vpop.xlane.xlu1 %1123 }
 0x192   : > { %v1633_v56 = vperm.slane %v1166_v51, %v2702_v17  ;;  %v1606_v54 = vperm.slane %v1124_v46, %v2674_v58  ;;  %v1121_v53 = vpop.xlane.xlu0 %1120  ;;  %v1327_v51 = vld [vmem:[%s2586_s16 + $0x78] sm:$0xff] }
 0x193   : > { %v1605_v47 = vperm.slane %v1121_v53, %v2668_v55  ;;  %1739 = vmatpush.msra.mxu0 %v1327_v51  ;;  %v1326_v53 = vld [vmem:[%s2586_s16 + $0x70] sm:$0xff]  ;;  %v1360_v51 = vld [vmem:[%s2586_s16 + $0x180] sm:$0xff] }
 0x194   : > { %v1634_v59 = vsel %vm1509_vm7, %v1633_v56, %v1632_v50  ;;  %v1344_v50 = vld [vmem:[%s2586_s16 + $0x100] sm:$0xff] }
 0x195   : > { %v2961_v52 = vsel %vm1485_vm1, %v1606_v54, %v1605_v47  ;;  %1740 = vmatpush.msra.mxu0 %v1326_v53  ;;  %v1325_v47 = vld [vmem:[%s2586_s16 + $0x68] sm:$0xff]  ;;  %v1316_v53 = vld [vmem:[%s2586_s16 + $0x20] sm:$0xff] }
 0x197   : > { %1741 = vmatpush.msra.mxu0 %v1325_v47 }
 0x199   : > { %v1289_v3 = vpop.xlane.xlu2 %1288  ;;  %v2965_v5 = vpop.xlane.xlu1 %1273 }
 0x19a   : > { %v1214_v6 = vpop.xlane.xlu0 %1213  ;;  %v1713_v16 = vperm.slane %v1289_v3, %v2668_v55  ;;  %v1352_v55 = vld [vmem:[%s2586_s16 + $0x140] sm:$0xff]  ;;  %v1323_v3 = vld [vmem:[%s2586_s16 + $0x58] sm:$0xff] }
 0x19b   : > { %v1664_v7 = vperm.slane %v1214_v6, %v2702_v17  ;;  %1786 = vmatpush.msra.mxu2 %v1352_v55  ;;  %v1342_v6 = vld [vmem:[%s2586_s16 + $0xf0] sm:$0xff]  ;;  %v1363_v55 = vld [vmem:[%s2586_s16 + $0x198] sm:$0xff] }
 0x19c   : > { %1760 = vmatpush.msra.mxu1 %v1342_v6 }
 0x19d   : > { %v1665_v9 = vsel %vm1509_vm7, %v1664_v7, %v1663_v49  ;;  %1787 = vmatpush.msra.mxu2 %v1351_v30  ;;  %v1366_v7 = vld [vmem:[%s2586_s16 + $0x1b0] sm:$0xff]  ;;  %v1319_v30 = vld [vmem:[%s2586_s16 + $0x38] sm:$0xff] }
 0x19e   : > { %1808 = vmatpush.msra.mxu3 %v1366_v7  ;;  %1761 = vmatpush.msra.mxu1 %v1341_v12 }
 0x19f   : > { %1788 = vmatpush.msra.mxu2 %v1350_v32  ;;  %v1338_v32 = vld [vmem:[%s2586_s16 + $0xd0] sm:$0xff] }
 0x1a1   : > { %v1169_v18 = vpop.xlane.xlu2 %1168  ;;  %v2974_v14 = vpop.xlane.xlu1 %1126  ;;  %1789 = vmatpush.msra.mxu2 %v1349_v43 }
 0x1a2   : > { %v1635_v23 = vperm.slane %v1169_v18, %v2696_v13  ;;  %v1292_v24 = vpop.xlane.xlu0 %1291  ;;  %v1321_v18 = vld [vmem:[%s2586_s16 + $0x48] sm:$0xff] }
 0x1a3   : > { %v1714_v25 = vperm.slane %v1292_v24, %v2674_v58  ;;  %1790 = vmatpush.msra.mxu2 %v1348_v34  ;;  %v1364_v24 = vld [vmem:[%s2586_s16 + $0x1a0] sm:$0xff]  ;;  %v1318_v34 = vld [vmem:[%s2586_s16 + $0x30] sm:$0xff] }
 0x1a4   : > { %v2980_v28 = vsel %vm1513_vm8, %v1635_v23, %v1634_v59  ;;  %v1324_v59 = vld [vmem:[%s2586_s16 + $0x60] sm:$0xff] }
 0x1a5   : > { %v2983_v29 = vsel %vm1485_vm1, %v1714_v25, %v1713_v16  ;;  %1791 = vmatpush.msra.mxu2 %v1347_v35  ;;  %1742 = vmatpush.msra.mxu0 %v1324_v59  ;;  %v1365_v16 = vld [vmem:[%s2586_s16 + $0x1a8] sm:$0xff]  ;;  %v1340_v23 = vld [vmem:[%s2586_s16 + $0xe0] sm:$0xff]  ;;  %v1335_v59 = vld [vmem:[%s2586_s16 + $0xb8] sm:$0xff]  ;;  %vm1736_vm1 = vcmask 523264  }
 0x1a6   : > { %1809 = vmatpush.msra.mxu3 %v1365_v16  ;;  %v1320_v25 = vld [vmem:[%s2586_s16 + $0x40] sm:$0xff]  ;;  %1762 = vmatpush.msra.mxu1 %v1340_v23  ;;  %v1337_v35 = vld [vmem:[%s2586_s16 + $0xc8] sm:$0xff] }
 0x1a7   : > { %1792 = vmatpush.msra.mxu2 %v1346_v36  ;;  %1743 = vmatpush.msra.mxu0 %v1323_v3  ;;  %v1361_v36 = vld [vmem:[%s2586_s16 + $0x188] sm:$0xff] }
 0x1a8   : > { %1810 = vmatpush.msra.mxu3 %v1364_v24  ;;  %1763 = vmatpush.msra.mxu1 %v1339_v20  ;;  %v1313_v23 = vld [vmem:[%s2586_s16 + $0x8] sm:$0xff]  ;;  %v1332_v24 = vld [vmem:[%s2586_s16 + $0xa0] sm:$0xff] }
 0x1a9   : > { %v2988_v26 = vpop.xlane.xlu2 %1294  ;;  %v2990_v27 = vpop.xlane.xlu1 %1276  ;;  %1744 = vmatpush.msra.mxu0 %v1322_v11 }
 0x1aa   : > { %v1217_v58 = vpop.xlane.xlu0 %1216  ;;  %1811 = vmatpush.msra.mxu3 %v1363_v55  ;;  %1764 = vmatpush.msra.mxu1 %v1338_v32  ;;  %v1312_v55 = vld [vmem:[%s2586_s16] sm:$0xff]  ;;  %v1331_v32 = vld [vmem:[%s2586_s16 + $0x98] sm:$0xff] }
 0x1ab   : > { %v1666_v31 = vperm.slane %v1217_v58, %v2696_v13  ;;  %v1345_v13 = vld [vmem:[%s2586_s16 + $0x108] sm:$0xff]  ;;  %1745 = vmatpush.msra.mxu0 %v1321_v18  ;;  %v1362_v58 = vld [vmem:[%s2586_s16 + $0x190] sm:$0xff] }
 0x1ac   : > { %1793 = vmatpush.msra.mxu2 %v1345_v13  ;;  %1812 = vmatpush.msra.mxu3 %v1362_v58  ;;  %v1705_v13 = vperm.slane %v2990_v27, %v2748_v4  ;;  %v1333_v18 = vld [vmem:[%s2586_s16 + $0xa8] sm:$0xff]  ;;  %v1330_v58 = vld [vmem:[%s2586_s16 + $0x90] sm:$0xff] }
 0x1ad   : > { %v1667_v33 = vsel %vm1513_vm8, %v1666_v31, %v1665_v9  ;;  %1746 = vmatpush.msra.mxu0 %v1320_v25  ;;  %1765 = vmatpush.msra.mxu1 %v1337_v35 }
 0x1ae   : > { %1794 = vmatpush.msra.mxu2 %v1344_v50  ;;  %1813 = vmatpush.msra.mxu3 %v1361_v36  ;;  %v1336_v50 = vld [vmem:[%s2586_s16 + $0xc0] sm:$0xff] }
 0x1af   : > { %1747 = vmatpush.msra.mxu0 %v1319_v30  ;;  %1766 = vmatpush.msra.mxu1 %v1336_v50  ;;  %v1328_v36 = vld [vmem:[%s2586_s16 + $0x80] sm:$0xff]  ;;  %v1608_v50 = vperm.slane %v2974_v14, %v2677_v60 }
 0x1b0   : > { %1814 = vmatpush.msra.mxu3 %v1360_v51  ;;  %v1716_v51 = vperm.slane %v2988_v26, %v2677_v60 }
 0x1b1   : > { %v1220_v39 = vpop.xlane.xlu2 %1219  ;;  %v2998_v41 = vpop.xlane.xlu1 %1171  ;;  %1748 = vmatpush.msra.mxu0 %v1318_v34  ;;  %1767 = vmatpush.msra.mxu1 %v1335_v59  ;;  %v1609_v60 = vsel %vm1489_vm2, %v1608_v50, %v2961_v52 }
 0x1b2   : > { %v1668_v42 = vperm.slane %v1220_v39, %v2727_v40  ;;  %v3001_v45 = vpop.xlane.xlu0 %1129  ;;  %v1703_v39 = vperm.slane %v2965_v5, %v2720_v37  ;;  %v1717_v26 = vsel %vm1489_vm2, %v1716_v51, %v2983_v29 }
 0x1b3   : > { %1768 = vmatpush.msra.mxu1 %v1334_v63 }
 0x1b4   : > { %v3005_v49 = vsel %vm1517_vm9, %v1668_v42, %v1667_v33  ;;  %v1317_v42 = vld [vmem:[%s2586_s16 + $0x28] sm:$0xff]  ;;  %v1704_v27 = vsel %vm1525_vm11, %v1703_v39, %v2952_v48  ;;  %v1314_v48 = vld [vmem:[%s2586_s16 + $0x10] sm:$0xff] }
 0x1b5   : > { %1749 = vmatpush.msra.mxu0 %v1317_v42  ;;  %1769 = vmatpush.msra.mxu1 %v1333_v18 }
 0x1b7   : > { %1750 = vmatpush.msra.mxu0 %v1316_v53  ;;  %1770 = vmatpush.msra.mxu1 %v1332_v24  ;;  %v1610_v53 = vperm.slane %v3001_v45, %v2671_v57 }
 0x1b9   : > { %v3009_v46 = vpop.xlane.xlu2 %1132  ;;  %v3011_v56 = vpop.xlane.xlu1 %1297  ;;  %1751 = vmatpush.msra.mxu0 %v1315_v61  ;;  %1771 = vmatpush.msra.mxu1 %v1331_v32 }
 0x1ba   : > { %v3013_v54 = vpop.xlane.xlu0 %1279  ;;  %v1612_v59 = vperm.slane %v3009_v46, %v2683_v1  ;;  %v1611_v46 = vsel %vm1493_vm3, %v1610_v53, %v1609_v60 }
 0x1bb   : > { %v1707_v47 = vperm.slane %v3013_v54, %v2744_v2  ;;  %v1706_v54 = vsel %vm1529_vm12, %v1705_v13, %v1704_v27  ;;  %1752 = vmatpush.msra.mxu0 %v1314_v48  ;;  %1772 = vmatpush.msra.mxu1 %v1330_v58 }
 0x1bd   : > { %1753 = vmatpush.msra.mxu0 %v1313_v23 }
 0x1bf   : > { %1754 = vmatpush.msra.mxu0 %v1312_v55 }
 0x1c1   : > { %v3023_v8 = vpop.xlane.xlu2 %1282  ;;  %v3025_v9 = vpop.xlane.xlu1 %1222 }
 0x1c2   : > { %v3027_v10 = vpop.xlane.xlu0 %1174  ;;  %v1709_v5 = vperm.slane %v3023_v8, %v2741_v0  ;;  %v1708_v8 = vsel %vm1533_vm13, %v1707_v47, %v1706_v54  ;;  %v1718_v47 = vperm.slane %v3011_v56, %v2671_v57 }
 0x1c3   : > { %v1639_v48 = vperm.slane %v3027_v10, %v2723_v38 }
 0x1c4   : > { %v1710_v16 = vsel %vm1537_vm14, %v1709_v5, %v1708_v8  ;;  %v1719_v56 = vsel %vm1493_vm3, %v1718_v47, %v1717_v26 }
 0x1c9   : > { %v3041_v31 = vpop.xlane.xlu2 %1135  ;;  %v1118_v43 = vpop.xlane.xlu1 %1117 }
 0x1ca   : > { %v3043_v33 = vpop.xlane.xlu0 %1300  ;;  %v1603_v3 = vperm.slane %v1118_v43, %v2759_v22  ;;  %v1614_v5 = vperm.slane %v3041_v31, %v2680_v62  ;;  %v1613_v31 = vsel %vm1497_vm4, %v1612_v59, %v1611_v46  ;;  %v1311_v59 = vld [vmem:[#allocation2] sm:$0x3] }
 0x1cb   : > { %v1720_v61 = vperm.slane %v3043_v33, %v2683_v1 }
 0x1cc   : > { %v1604_v25 = vsel %vm1541_vm15, %v1603_v3, %v2879_v15  ;;  %v1329_v15 = vld [vmem:[%s2586_s16 + $0x88] sm:$0xff]  ;;  %v1615_v52 = vsel %vm1501_vm5, %v1614_v5, %v1613_v31 }
 0x1cd   : > { %1773 = vmatpush.msra.mxu1 %v1329_v15 }
 0x1cf   : > { %1774 = vmatpush.msra.mxu1 %v1328_v36 }
 0x1d1   : > { %v1286_v6 = vpop.xlane.xlu2 %1285  ;;  %v3067_v7 = vpop.xlane.xlu1 %1225 }
 0x1d2   : > { %v1711_v11 = vperm.slane %v1286_v6, %v2759_v22  ;;  %v3071_v12 = vpop.xlane.xlu0 %1177  ;;  %v1637_v6 = vperm.slane %v2998_v41, %v2727_v40 }
 0x1d4   : > { %v1712_v20 = vsel %vm1541_vm15, %v1711_v11, %v1710_v16  ;;  %v1638_v23 = vsel %vm1517_vm9, %v1637_v6, %v2980_v28  ;;  %v1672_v28 = vperm.slane %v3067_v7, %v2720_v37 }
 0x1d5   : > { %v1731_v30 = vsel %vm1728_vm0, %v1712_v20, %v1604_v25  ;;  %v1640_v41 = vsel %vm1521_vm10, %v1639_v48, %v1638_v23 }
 0x1d6   : > { %1795 = vmatmul.f32.vlgmr.msra.gmra.mxu2 %v1731_v30  ;;  %v1670_v30 = vperm.slane %v3025_v9, %v2723_v38 }
 0x1d8   : > { %v1671_v38 = vsel %vm1521_vm10, %v1670_v30, %v3005_v49 }
 0x1d9   : > { %v1181_v43 = vpop.xlane.xlu2 %1180  ;;  %v1139_v34 = vpop.xlane.xlu1 %1138 }
 0x1da   : > { %v1304_v35 = vpop.xlane.xlu0 %1303  ;;  %v1616_v45 = vperm.slane %v1139_v34, %v2706_v19  ;;  %v1643_v18 = vperm.slane %v1181_v43, %v2748_v4 }
 0x1db   : > { %v1722_v14 = vperm.slane %v1304_v35, %v2680_v62  ;;  %v1721_v62 = vsel %vm1497_vm4, %v1720_v61, %v1719_v56 }
 0x1dd   : > { %v1723_v63 = vsel %vm1501_vm5, %v1722_v14, %v1721_v62 }
 0x1e1   : > { %v1142_v39 = vpop.xlane.xlu2 %1141  ;;  %v1307_v42 = vpop.xlane.xlu1 %1306 }
 0x1e2   : > { %v1229_v13 = vpop.xlane.xlu0 %1228  ;;  %v1724_v57 = vperm.slane %v1307_v42, %v2706_v19  ;;  %v1618_v1 = vperm.slane %v1142_v39, %v2702_v17  ;;  %v1617_v19 = vsel %vm1505_vm6, %v1616_v45, %v1615_v52 }
 0x1e3   : > { %v1674_v34 = vperm.slane %v1229_v13, %v2748_v4 }
 0x1e4   : > { %v1725_v3 = vsel %vm1505_vm6, %v1724_v57, %v1723_v63  ;;  %v1619_v8 = vsel %vm1509_vm7, %v1618_v1, %v1617_v19 }
 0x1e9   : > { %v1310_v33 = vpop.xlane.xlu2 %1309  ;;  %v1232_v54 = vpop.xlane.xlu1 %1231 }
 0x1ea   : > { %v1726_v29 = vperm.slane %v1310_v33, %v2702_v17  ;;  %v1184_v27 = vpop.xlane.xlu0 %1183  ;;  %v1641_v17 = vperm.slane %v3071_v12, %v2720_v37  ;;  %v1676_v15 = vperm.slane %v1232_v54, %v2744_v2  ;;  %v1673_v37 = vsel %vm1525_vm11, %v1672_v28, %v1671_v38 }
 0x1eb   : > { %v1645_v40 = vperm.slane %v1184_v27, %v2744_v2  ;;  %v1675_v7 = vsel %vm1529_vm12, %v1674_v34, %v1673_v37 }
 0x1ec   : > { %v1727_v11 = vsel %vm1509_vm7, %v1726_v29, %v1725_v3  ;;  %v1642_v25 = vsel %vm1525_vm11, %v1641_v17, %v1640_v41  ;;  %v1677_v4 = vsel %vm1533_vm13, %v1676_v15, %v1675_v7 }
 0x1ed   : > { %v1732_v16 = vsel %vm1728_vm0, %v1727_v11, %v1619_v8  ;;  %v1644_v55 = vsel %vm1529_vm12, %v1643_v18, %v1642_v25 }
 0x1ee   : > { %1973 = vmatmul.msk.f32.vlgmr.msra.gmra.mxu3 %vm1736_vm1, %v1732_v16  ;;  %v1646_v32 = vsel %vm1533_vm13, %v1645_v40, %v1644_v55 }
 0x1f1   : > { %v1190_v24 = vpop.xlane.xlu2 %1189  ;;  %v1235_v58 = vpop.xlane.xlu1 %1234 }
 0x1f2   : > { %v1187_v20 = vpop.xlane.xlu0 %1186  ;;  %v1649_v10 = vperm.slane %v1190_v24, %v2759_v22  ;;  %v1678_v9 = vperm.slane %v1235_v58, %v2741_v0 }
 0x1f3   : > { %v1647_v12 = vperm.slane %v1187_v20, %v2741_v0 }
 0x1f4   : > { %v1679_v2 = vsel %vm1537_vm14, %v1678_v9, %v1677_v4 }
 0x1f5   : > { %v1648_v43 = vsel %vm1537_vm14, %v1647_v12, %v1646_v32 }
 0x1f6   : > { %v1650_v35 = vsel %vm1541_vm15, %v1649_v10, %v1648_v43 }
 0x1f7   : > { %v1729_v36 = vsel %vm1728_vm0, %v1650_v35, %v2773_v44 }
 0x1f8   : > { %1755 = vmatmul.f32.vlgmr.msra.gmra.mxu0 %v1729_v36 }
 0x1fa   : > { %v1238_v39 = vpop.xlane.xlu0 %1237 }
 0x1fb   : > { %v1680_v42 = vperm.slane %v1238_v39, %v2759_v22 }
 0x1fd   : > { %v1681_v13 = vsel %vm1541_vm15, %v1680_v42, %v1679_v2 }
 0x1fe   : > { %v1730_v44 = vsel %vm1728_vm0, %v1681_v13, %v2825_v21 }
 0x1ff   : > { %1775 = vmatmul.f32.vlgmr.msra.gmra.mxu1 %v1730_v44 }
 0x259   : > { %v1796_v51 = vpop.f32.mrf.mxu2 }
 0x271   : > { %v1816_v47 = vpop.f32.mrf.mxu3 }
 0x275   : > { %v1756_v49 = vpop.f32.mrf.mxu0 }
 0x27c   : > { %v1776_v0 = vpop.f32.mrf.mxu1 }
 0x27d   : > { %v1777_v50 = vadd.f32 %v1776_v0, %v1756_v49 }
 0x27f   : > { %v1797_v53 = vadd.f32 %v1796_v51, %v1777_v50 }
 0x281   : > { %v1817_v61 = vadd.f32 %v1816_v47, %v1797_v53  ;;  %1824 = sbr.rel (%p1974_p11) target bundleno = 1061 (0x425), region = 89 }
 0x283   : > { %v1819_v5 = vadd.f32 %v1817_v61, %v1311_v59 }
 0x285   : > { %1820 = vst [vmem:[#allocation2] sm:$0x3] %v1819_v5 }
 0x286   : > { %v1846_v22 = vld [vmem:[%s3236_s3 + $0x78] sm:$0xff]  ;;  %v1845_v21 = vld [vmem:[%s3236_s3 + $0x70] sm:$0xff]  ;;  %v1844_v14 = vld [vmem:[%s3236_s3 + $0x68] sm:$0xff]  ;;  %vm1871_vm2 = vcmask 1041408  }
 0x287   : > { %1851 = vmatpush.msra.mxu0 %v1846_v22  ;;  %v1843_v60 = vld [vmem:[%s3236_s3 + $0x60] sm:$0xff]  ;;  %v1842_v26 = vld [vmem:[%s3236_s3 + $0x58] sm:$0xff]  ;;  %v1841_v45 = vld [vmem:[%s3236_s3 + $0x50] sm:$0xff] }
 0x288   : > { %v1840_v57 = vld [vmem:[%s3236_s3 + $0x48] sm:$0xff]  ;;  %v1839_v46 = vld [vmem:[%s3236_s3 + $0x40] sm:$0xff]  ;;  %v1838_v56 = vld [vmem:[%s3236_s3 + $0x38] sm:$0xff] }
 0x289   : > { %1852 = vmatpush.msra.mxu0 %v1845_v21  ;;  %v1837_v1 = vld [vmem:[%s3236_s3 + $0x30] sm:$0xff]  ;;  %v1836_v31 = vld [vmem:[%s3236_s3 + $0x28] sm:$0xff]  ;;  %v1835_v62 = vld [vmem:[%s3236_s3 + $0x20] sm:$0xff] }
 0x28a   : > { %v1834_v33 = vld [vmem:[%s3236_s3 + $0x18] sm:$0xff]  ;;  %v1833_v52 = vld [vmem:[%s3236_s3 + $0x10] sm:$0xff]  ;;  %v2309_v63 = vld [vmem:[%s3235_s2] ss:$0 sm:$0xff] }
 0x28b   : > { %1853 = vmatpush.msra.mxu0 %v1844_v14  ;;  %v1832_v27 = vld [vmem:[%s3236_s3 + $0x8] sm:$0xff]  ;;  %v1831_v19 = vld [vmem:[%s3236_s3] sm:$0xff] }
 0x28c   : > { %v1825_v29 = vld [vmem:[#allocation2] sm:$0x3] }
 0x28d   : > { %1854 = vmatpush.msra.mxu0 %v1843_v60  ;;  %v1830_v3 = vadd.f32 %v2309_v63, %v1825_v29  ;;  %v2310_v54 = vld [vmem:[%s3237_s4] ss:$0 sm:$0xff] }
 0x28f   : > { %1855 = vmatpush.msra.mxu0 %v1842_v26 }
 0x291   : > { %1856 = vmatpush.msra.mxu0 %v1841_v45 }
 0x293   : > { %1857 = vmatpush.msra.mxu0 %v1840_v57 }
 0x295   : > { %1858 = vmatpush.msra.mxu0 %v1839_v46 }
 0x297   : > { %1859 = vmatpush.msra.mxu0 %v1838_v56 }
 0x299   : > { %1860 = vmatpush.msra.mxu0 %v1837_v1 }
 0x29b   : > { %1861 = vmatpush.msra.mxu0 %v1836_v31 }
 0x29d   : > { %1862 = vmatpush.msra.mxu0 %v1835_v62 }
 0x29f   : > { %1863 = vmatpush.msra.mxu0 %v1834_v33 }
 0x2a1   : > { %1864 = vmatpush.msra.mxu0 %v1833_v52 }
 0x2a3   : > { %1865 = vmatpush.msra.mxu0 %v1832_v27 }
 0x2a5   : > { %1866 = vmatpush.msra.mxu0 %v1831_v19 }
 0x2a6   : > { %1867 = vmatmul.f32.vlgmr.msra.gmra.mxu0 %v1830_v3 }
 0x323   : > { %v1868_v6 = vpop.f32.mrf.mxu0 }
 0x324   : > { %v1869_v8 = vadd.f32 %v2310_v54, %v1868_v6 }
 0x326   : > { %v1872_v11 = vsel %vm1871_vm2, %v1869_v8, -inf }
 0x327   : > { %1873 = vmax.xlane.f32.xlu0 %v1872_v11 }
 0x39a   : > { %v1874_v48 = vpop.xlane.xlu0 %1873 }
 0x39b   : > { %v1875_v16 = vsub.f32 %v1869_v8, %v1874_v48 }
 0x39d   : > { %v1876_v17 = vmul.f32 1.442695, %v1875_v16 }
 0x39f   : > { %2311 = vpow2.f32 %v1876_v17 }
 0x3a5   : > { %v2312_v18 = vpop.eup %2311 }
 0x3a6   : > { %v1878_v23 = vsel %vm1871_vm2, %v2312_v18, 0.0 }
 0x3a7   : > { %1879 = vadd.xlane.f32.xlu0 %v1878_v23 }
 0x41a   : > { %v1880_v40 = vpop.xlane.xlu0 %1879 }
 0x41b   : > { %2313 = vrcp.f32 %v1880_v40 }
 0x421   : > { %v2314_v41 = vpop.eup %2313 }
 0x422   : > { %v1882_v24 = vmul.f32 %v2314_v41, %v2312_v18 }
 0x424   : > { %1883 = vst [vmem:[#allocation4] sm:$0x3] %v1882_v24 }
 0x425 PF: > { %p2265_p12 = scmp.eq.s32.totalorder %s1966_s23, 3  ;;  %s1894_s18 = sshll.u32 %s3238_s5, 4  ;;  %s1895_s18 = int_to_ptr.hbm [resolvable:$true] %s1894_s18 }
 0x426   : > { %s2388_s25 = smov [#allocation4]  }
 0x427   : > { %s1892_s26 = sshll.u32 %s2388_s25, 4  ;;  %s1893_s26 = int_to_ptr.vmem [resolvable:$true] %s1892_s26 }
 0x428   : > { %2262 = dma.vmem_to_hbm [thread:$0]  (%p2265_p12), %s1893_s26, 32, %s1895_s18, [#allocation5]  }
 0x429   : > { %2364 = dma.done.wait (%p2265_p12), [#allocation5], 32  }
 0x42a   : > { %2366 = vsyncadd (%p2265_p12), [#allocation5], 4294967264 }
 0x42b PF: > { %s16_s22 = sadd.s32 1, %s2385_s22   ;;  %s3239_s18 = smov %s2373_s19 }
 0x42c   : > { %p13_p13 = scmp.ge.s32.totalorder %s16_s22, 6   ;;  %s3240_s19 = smov %s2455_s27 }
 0x42d   : > { %s3241_s20 = smov %s2381_s21  ;;  %s3242_s21 = smov %s3244_s24 }
 0x42e   :  { %15 = sbr.rel (!%p13_p13) target bundleno = 3 (0x3), region = 125 }
 0x433   :  { %1908 = vsyncpa [#allocation5], 1 }
 0x434   :  { %1910 = vsyncpa [#allocation5 + $0x1], 1 }

</bundles_post_ra>
